<compile_context>
chip_gen: v6e
topology: v6e:2x2x1
jax: 0.10.0
libtpu: 0.0.40
codegen_flags: <defaults>
</compile_context>

<pallas_src>
import jax
import jax.numpy as jnp
import numpy as np
from jax.experimental import pallas as pl
from jax.experimental.pallas import tpu as pltpu


# -----------------------------------------------------------------------------
# Kernels
# -----------------------------------------------------------------------------
def _conv_bn_relu_kernel(p_ref, w_ref, scale_ref, bias_ref, o_ref):
    """Fused (im2col-matmul conv1) + folded-BN1 affine + ReLU.

    p_ref:     (Bt, HW, K)  im2col patches of the input, channel-last
    w_ref:     (K, C)       conv1 weight reshaped for right-multiplication
    scale_ref: (1, C)       gamma / sqrt(var + eps)
    bias_ref:  (1, C)       (conv_bias - running_mean) * scale + beta
    o_ref:     (Bt, HW, C)  lane-dense output
    """
    w = w_ref[...]
    scale = scale_ref[...]
    bias = bias_ref[...]
    for b in range(p_ref.shape[0]):                      # static unroll over batch tile
        z = jnp.dot(p_ref[b], w, preferred_element_type=jnp.float32)   # MXU, (HW, C)
        z = z * scale + bias
        o_ref[b] = jnp.maximum(z, 0.0).astype(o_ref.dtype)


def _conv_bn_se_residual_kernel(p_ref, res_ref, w_ref, scale_ref, bias_ref,
                                w1_ref, w2t_ref, o_ref):
    """Fused conv2 + bn2 + squeeze-excite gate + residual add + ReLU.

    p_ref:   (Bt, HW, K)  im2col patches of relu(bn1(conv1(x)))
    res_ref: (Bt, HW, C)  residual (block input x), channel-last
    w_ref:   (K, C)       conv2 weight
    scale_ref/bias_ref: (1, C)  folded inference-BN2 affine
    w1_ref:  (Cr, C)      SE fc1 weight (nn.Linear layout: (out, in))
    w2t_ref: (Cr, C)      SE fc2 weight transposed (row j == W2[:, j])
    o_ref:   (Bt, HW, C)  lane-dense output
    """
    w = w_ref[...]
    scale = scale_ref[...]
    bias = bias_ref[...]
    w1 = w1_ref[...]
    w2t = w2t_ref[...]
    bt, hw, _ = p_ref.shape
    cr = w1.shape[0]
    inv_hw = 1.0 / hw

    for b in range(bt):                                  # static unroll over batch tile
        # conv2 as an MXU matmul + folded BN2 affine.
        z = jnp.dot(p_ref[b], w, preferred_element_type=jnp.float32)   # (HW, C)
        z = z * scale + bias

        # SE squeeze: global average pool over spatial -> (1, C) (sublane reduce).
        pooled = jnp.sum(z, axis=0, keepdims=True) * inv_hw

        # SE excitation on the VPU/XLU (no degenerate N=1 MXU matmuls):
        #   h_j = relu(<pooled, W1[j, :]>),   s = sigmoid(sum_j h_j * W2[:, j])
        s = jnp.zeros_like(pooled)
        for j in range(cr):                              # Cr is tiny -> static unroll
            hj = jnp.sum(pooled * w1[j:j + 1, :], axis=-1, keepdims=True)   # (1, 1)
            hj = jnp.maximum(hj, 0.0)
            s = s + hj * w2t[j:j + 1, :]                 # (1, C)
        s = jax.nn.sigmoid(s)                            # per-channel gate, (1, C)

        # Gate (sublane broadcast), residual add, final ReLU; lane-dense store.
        out = jnp.maximum(z * s + res_ref[b], 0.0)
        o_ref[b] = out.astype(o_ref.dtype)


# -----------------------------------------------------------------------------
# Wrapper helpers (layout plumbing only; all FLOPs live in the kernels)
# -----------------------------------------------------------------------------
def _pick_batch_tile(batch, bytes_per_image, target_block_bytes=2 << 20):
    """Fold several small images per grid step (bigger VMEM blocks), but keep
    >= 2 grid steps when possible so the DMA pipeline / megacore have work."""
    bt = max(1, min(batch, target_block_bytes // max(1, bytes_per_image)))
    if batch >= 2:
        bt = min(bt, batch // 2)
    bt = max(1, bt)
    while batch % bt:
        bt -= 1
    return bt


def _im2col_3x3(x_nhwc):
    """3x3 / stride-1 / pad-1 patch extraction (wrapper-side layout plumbing).
    (B, H, W, C) -> (B, H*W, 9*C), last-dim order (dy, dx, c)."""
    b, h, w, c = x_nhwc.shape
    xp = jnp.pad(x_nhwc, ((0, 0), (1, 1), (1, 1), (0, 0)))
    cols = [xp[:, dy:dy + h, dx:dx + w, :] for dy in range(3) for dx in range(3)]
    return jnp.concatenate(cols, axis=-1).reshape(b, h * w, 9 * c)


def _conv_w_to_mat(w):
    """(Cout, Cin, 3, 3) -> (9*Cin, Cout), matching _im2col_3x3's (dy, dx, c) order."""
    cout, cin = w.shape[0], w.shape[1]
    return jnp.transpose(w, (2, 3, 1, 0)).reshape(9 * cin, cout)


def _fold_bn(conv_bias, gamma, beta, mean, var, eps):
    """Inference-mode BatchNorm folded into a per-channel affine (post-matmul)."""
    scale = gamma / jnp.sqrt(var + eps)
    bias = (conv_bias - mean) * scale + beta
    return scale, bias


def _conv_bn_relu(patches, w_mat, scale, bias):
    B, HW, K = patches.shape
    C = w_mat.shape[1]
    bt = _pick_batch_tile(B, 4 * HW * (K + C))
    cost = pl.CostEstimate(
        flops=2 * B * HW * K * C,
        transcendentals=0,
        bytes_accessed=4 * (B * HW * (K + C) + K * C + 2 * C))
    return pl.pallas_call(
        _conv_bn_relu_kernel,
        out_shape=jax.ShapeDtypeStruct((B, HW, C), patches.dtype),
        grid_spec=pltpu.PrefetchScalarGridSpec(
            num_scalar_prefetch=0,
            grid=(B // bt,),
            in_specs=[
                pl.BlockSpec((bt, HW, K), lambda i: (i, 0, 0)),
                pl.BlockSpec((K, C), lambda i: (0, 0)),
                pl.BlockSpec((1, C), lambda i: (0, 0)),
                pl.BlockSpec((1, C), lambda i: (0, 0)),
            ],
            out_specs=pl.BlockSpec((bt, HW, C), lambda i: (i, 0, 0)),
        ),
        compiler_params=pltpu.CompilerParams(dimension_semantics=("parallel",)),
        cost_estimate=cost,
    )(patches, w_mat, scale.reshape(1, C), bias.reshape(1, C))


def _conv_bn_se_residual(patches, residual, w_mat, scale, bias, w_se1, w_se2):
    B, HW, K = patches.shape
    C = w_mat.shape[1]
    Cr = w_se1.shape[0]
    bt = _pick_batch_tile(B, 4 * HW * (K + 2 * C))
    cost = pl.CostEstimate(
        flops=2 * B * HW * K * C + 4 * B * C * Cr,
        transcendentals=B * C,                       # sigmoid gate
        bytes_accessed=4 * (B * HW * (K + 2 * C) + K * C + 2 * C + 2 * Cr * C))
    return pl.pallas_call(
        _conv_bn_se_residual_kernel,
        out_shape=jax.ShapeDtypeStruct((B, HW, C), patches.dtype),
        grid_spec=pltpu.PrefetchScalarGridSpec(
            num_scalar_prefetch=0,
            grid=(B // bt,),
            in_specs=[
                pl.BlockSpec((bt, HW, K), lambda i: (i, 0, 0)),
                pl.BlockSpec((bt, HW, C), lambda i: (i, 0, 0)),
                pl.BlockSpec((K, C), lambda i: (0, 0)),
                pl.BlockSpec((1, C), lambda i: (0, 0)),
                pl.BlockSpec((1, C), lambda i: (0, 0)),
                pl.BlockSpec((Cr, C), lambda i: (0, 0)),
                pl.BlockSpec((Cr, C), lambda i: (0, 0)),
            ],
            out_specs=pl.BlockSpec((bt, HW, C), lambda i: (i, 0, 0)),
        ),
        compiler_params=pltpu.CompilerParams(dimension_semantics=("parallel",)),
        cost_estimate=cost,
    )(patches, residual, w_mat, scale.reshape(1, C), bias.reshape(1, C),
      w_se1, jnp.transpose(w_se2))


@jax.jit
def basic_block_forward(x, params):
    """x: (B, Cin, H, W) float32 NCHW.  Inference-mode BasicBlock forward
    (stride=1, downsample=None -> requires Cin == planes)."""
    eps = 1e-5
    B, Cin, H, W = x.shape
    planes = params["conv1_w"].shape[0]
    HW = H * W

    # Channel-last (lane-dense) layout for all kernel work.
    x_nhwc = jnp.transpose(x, (0, 2, 3, 1))
    residual = x_nhwc.reshape(B, HW, Cin)            # downsample=None -> identity

    # conv1 + bn1 + relu
    s1, b1 = _fold_bn(params["conv1_b"], params["bn1_gamma"], params["bn1_beta"],
                      params["bn1_mean"], params["bn1_var"], eps)
    p1 = _im2col_3x3(x_nhwc)
    out1 = _conv_bn_relu(p1, _conv_w_to_mat(params["conv1_w"]), s1, b1)

    # conv2 + bn2 + SE + residual add + relu (single fused kernel)
    s2, b2 = _fold_bn(params["conv2_b"], params["bn2_gamma"], params["bn2_beta"],
                      params["bn2_mean"], params["bn2_var"], eps)
    p2 = _im2col_3x3(out1.reshape(B, H, W, planes))
    out = _conv_bn_se_residual(p2, residual, _conv_w_to_mat(params["conv2_w"]),
                               s2, b2, params["se_w1"], params["se_w2"])

    # TODO(synk): Dropout(p=0.1) is the identity in eval mode; train-mode RNG
    # masking (and train-mode BatchNorm batch statistics) are not implemented.
    return jnp.transpose(out.reshape(B, H, W, planes), (0, 3, 1, 2))


# -----------------------------------------------------------------------------
# Pure-JAX reference (matches the PyTorch module in eval mode)
# -----------------------------------------------------------------------------
def basic_block_reference(x, params, eps=1e-5):
    def conv3x3(inp, w, b):
        y = jax.lax.conv_general_dilated(
            inp, w, window_strides=(1, 1), padding=((1, 1), (1, 1)),
            dimension_numbers=("NCHW", "OIHW", "NCHW"))
        return y + b[None, :, None, None]

    def bn(inp, g, be, m, v):
        inv = 1.0 / jnp.sqrt(v + eps)
        return (inp - m[None, :, None, None]) * (g * inv)[None, :, None, None] \
            + be[None, :, None, None]

    out = jax.nn.relu(bn(conv3x3(x, params["conv1_w"], params["conv1_b"]),
                         params["bn1_gamma"], params["bn1_beta"],
                         params["bn1_mean"], params["bn1_var"]))
    out = bn(conv3x3(out, params["conv2_w"], params["conv2_b"]),
             params["bn2_gamma"], params["bn2_beta"],
             params["bn2_mean"], params["bn2_var"])
    y = jnp.mean(out, axis=(2, 3))
    s = jax.nn.sigmoid(jax.nn.relu(y @ params["se_w1"].T) @ params["se_w2"].T)
    out = out * s[:, :, None, None]
    return jax.nn.relu(out + x)                      # Dropout(0.1) == identity (eval)


if __name__ == "__main__":
    # Small shapes consistent with the module: BasicBlock(32, 32, reduction=16).
    B, C, H, W = 2, 32, 16, 16
    reduction = 16
    Cr = C // reduction

    key = jax.random.PRNGKey(0)
    ks = jax.random.split(key, 12)

    def bf16_snap(a):
        # Snap to bf16-representable f32 values so the MXU's default f32
        # (bf16-pass) rounding is exact on both the Pallas and the XLA reference
        # conv paths, allowing a tight numerical comparison.
        return a.astype(jnp.bfloat16).astype(jnp.float32)

    x = bf16_snap(jax.random.normal(ks[0], (B, C, H, W), dtype=jnp.float32))
    params = {
        "conv1_w": bf16_snap(jax.random.normal(ks[1], (C, C, 3, 3), jnp.float32)
                             / np.sqrt(9 * C)),
        "conv1_b": bf16_snap(0.1 * jax.random.normal(ks[2], (C,), jnp.float32)),
        "bn1_gamma": 1.0 + 0.1 * jax.random.normal(ks[3], (C,), jnp.float32),
        "bn1_beta": 0.1 * jax.random.normal(ks[4], (C,), jnp.float32),
        "bn1_mean": 0.1 * jax.random.normal(ks[5], (C,), jnp.float32),
        "bn1_var": jax.random.uniform(ks[6], (C,), jnp.float32, 0.5, 1.5),
        "conv2_w": bf16_snap(jax.random.normal(ks[7], (C, C, 3, 3), jnp.float32)
                             / np.sqrt(9 * C)),
        "conv2_b": bf16_snap(0.1 * jax.random.normal(ks[8], (C,), jnp.float32)),
        "bn2_gamma": 1.0 + 0.1 * jax.random.normal(ks[9], (C,), jnp.float32),
        "bn2_beta": 0.1 * jax.random.normal(ks[10], (C,), jnp.float32),
        "bn2_mean": 0.1 * jax.random.normal(ks[11], (C,), jnp.float32),
        "bn2_var": jax.random.uniform(jax.random.fold_in(key, 100), (C,),
                                      jnp.float32, 0.5, 1.5),
        "se_w1": bf16_snap(jax.random.normal(jax.random.fold_in(key, 101),
                                             (Cr, C), jnp.float32) / np.sqrt(C)),
        "se_w2": bf16_snap(jax.random.normal(jax.random.fold_in(key, 102),
                                             (C, Cr), jnp.float32) / np.sqrt(Cr)),
    }

    out = jax.block_until_ready(basic_block_forward(x, params))
    ref = basic_block_reference(x, params)
    np.testing.assert_allclose(np.asarray(out), np.asarray(ref), rtol=5e-3, atol=5e-3)

    print("KERNEL_OK")
</pallas_src>

<mosaic_0001>
module attributes {stable_mosaic.version = 11 : i64} {
  func.func @_conv_bn_relu_kernel(%arg0: i32, %arg1: memref<1x256x288xf32, #tpu.memory_space<vmem>>, %arg2: memref<288x32xf32, #tpu.memory_space<vmem>>, %arg3: memref<1x32xf32, #tpu.memory_space<vmem>>, %arg4: memref<1x32xf32, #tpu.memory_space<vmem>>, %arg5: memref<1x256x32xf32, #tpu.memory_space<vmem>>) attributes {dimension_semantics = [#tpu.dimension_semantics<parallel>], iteration_bounds = array<i64: 2>, scalar_prefetch = 0 : i64, scratch_operands = 0 : i64, tpu.core_type = #tpu.core_type<tc>, window_params = [{transform_indices = @transform_0, window_bounds = array<i64: 1, 256, 288>}, {pipeline_mode = #tpu.pipeline_mode<synchronous>, transform_indices = @transform_1, window_bounds = array<i64: 288, 32>}, {pipeline_mode = #tpu.pipeline_mode<synchronous>, transform_indices = @transform_2, window_bounds = array<i64: 1, 32>}, {pipeline_mode = #tpu.pipeline_mode<synchronous>, transform_indices = @transform_3, window_bounds = array<i64: 1, 32>}, {transform_indices = @transform_4, window_bounds = array<i64: 1, 256, 32>}]} {
    %c0 = arith.constant 0 : index
    %c0_0 = arith.constant 0 : index
    %0 = vector.load %arg2[%c0, %c0_0] : memref<288x32xf32, #tpu.memory_space<vmem>>, vector<288x32xf32>
    %c0_1 = arith.constant 0 : index
    %c0_2 = arith.constant 0 : index
    %1 = vector.load %arg3[%c0_1, %c0_2] : memref<1x32xf32, #tpu.memory_space<vmem>>, vector<1x32xf32>
    %c0_3 = arith.constant 0 : index
    %c0_4 = arith.constant 0 : index
    %2 = vector.load %arg4[%c0_3, %c0_4] : memref<1x32xf32, #tpu.memory_space<vmem>>, vector<1x32xf32>
    %c0_5 = arith.constant 0 : index
    %c0_6 = arith.constant 0 : index
    %c0_7 = arith.constant 0 : index
    %3 = vector.load %arg1[%c0_5, %c0_6, %c0_7] : memref<1x256x288xf32, #tpu.memory_space<vmem>>, vector<1x256x288xf32>
    %4 = vector.shape_cast %3 : vector<1x256x288xf32> to vector<256x288xf32>
    %cst = arith.constant dense<0.000000e+00> : vector<256x32xf32>
    %5 = tpu.matmul %4, %0, %cst {dimension_numbers = #tpu.dot_dimension_numbers<[1], [0], [0], [1], [0, 0, 1, 1], [], []>} : vector<256x288xf32>, vector<288x32xf32>, vector<256x32xf32> -> vector<256x32xf32>
    %6 = vector.broadcast %1 : vector<1x32xf32> to vector<256x32xf32>
    %7 = arith.mulf %5, %6 : vector<256x32xf32>
    %8 = vector.broadcast %2 : vector<1x32xf32> to vector<256x32xf32>
    %9 = arith.addf %7, %8 : vector<256x32xf32>
    %cst_8 = arith.constant 0.000000e+00 : f32
    %10 = vector.broadcast %cst_8 : f32 to vector<256x32xf32>
    %11 = arith.maximumf %9, %10 : vector<256x32xf32>
    %c0_9 = arith.constant 0 : index
    %c0_10 = arith.constant 0 : index
    %c0_11 = arith.constant 0 : index
    %12 = vector.load %arg5[%c0_9, %c0_10, %c0_11] : memref<1x256x32xf32, #tpu.memory_space<vmem>>, vector<1x256x32xf32>
    %13 = vector.shape_cast %12 : vector<1x256x32xf32> to vector<256x32xf32>
    %14 = vector.shape_cast %11 : vector<256x32xf32> to vector<1x256x32xf32>
    tpu.vector_store %arg5[%c0_9, %c0_10, %c0_11], %14 {strides = array<i32>} : memref<1x256x32xf32, #tpu.memory_space<vmem>>, vector<1x256x32xf32>,
    return
  }
  func.func @transform_0(%arg0: i32) -> (i32, i32, i32) {
    %c0_i32 = arith.constant 0 : i32
    %c0_i32_0 = arith.constant 0 : i32
    %c0_i32_1 = arith.constant 0 : i32
    return %arg0, %c0_i32, %c0_i32_0 : i32, i32, i32
  }
  func.func @transform_1(%arg0: i32) -> (i32, i32) {
    %c0_i32 = arith.constant 0 : i32
    %c0_i32_0 = arith.constant 0 : i32
    %c0_i32_1 = arith.constant 0 : i32
    return %c0_i32, %c0_i32_0 : i32, i32
  }
  func.func @transform_2(%arg0: i32) -> (i32, i32) {
    %c0_i32 = arith.constant 0 : i32
    %c0_i32_0 = arith.constant 0 : i32
    %c0_i32_1 = arith.constant 0 : i32
    return %c0_i32, %c0_i32_0 : i32, i32
  }
  func.func @transform_3(%arg0: i32) -> (i32, i32) {
    %c0_i32 = arith.constant 0 : i32
    %c0_i32_0 = arith.constant 0 : i32
    %c0_i32_1 = arith.constant 0 : i32
    return %c0_i32, %c0_i32_0 : i32, i32
  }
  func.func @transform_4(%arg0: i32) -> (i32, i32, i32) {
    %c0_i32 = arith.constant 0 : i32
    %c0_i32_0 = arith.constant 0 : i32
    %c0_i32_1 = arith.constant 0 : i32
    return %arg0, %c0_i32, %c0_i32_0 : i32, i32, i32
  }
}

module attributes {stable_mosaic.version = 11 : i64} {
  func.func @_conv_bn_se_residual_kernel(%arg0: i32, %arg1: memref<1x256x288xf32, #tpu.memory_space<vmem>>, %arg2: memref<1x256x32xf32, #tpu.memory_space<vmem>>, %arg3: memref<288x32xf32, #tpu.memory_space<vmem>>, %arg4: memref<1x32xf32, #tpu.memory_space<vmem>>, %arg5: memref<1x32xf32, #tpu.memory_space<vmem>>, %arg6: memref<2x32xf32, #tpu.memory_space<vmem>>, %arg7: memref<2x32xf32, #tpu.memory_space<vmem>>, %arg8: memref<1x256x32xf32, #tpu.memory_space<vmem>>) attributes {dimension_semantics = [#tpu.dimension_semantics<parallel>], iteration_bounds = array<i64: 2>, scalar_prefetch = 0 : i64, scratch_operands = 0 : i64, tpu.core_type = #tpu.core_type<tc>, window_params = [{transform_indices = @transform_0, window_bounds = array<i64: 1, 256, 288>}, {transform_indices = @transform_1, window_bounds = array<i64: 1, 256, 32>}, {pipeline_mode = #tpu.pipeline_mode<synchronous>, transform_indices = @transform_2, window_bounds = array<i64: 288, 32>}, {pipeline_mode = #tpu.pipeline_mode<synchronous>, transform_indices = @transform_3, window_bounds = array<i64: 1, 32>}, {pipeline_mode = #tpu.pipeline_mode<synchronous>, transform_indices = @transform_4, window_bounds = array<i64: 1, 32>}, {pipeline_mode = #tpu.pipeline_mode<synchronous>, transform_indices = @transform_5, window_bounds = array<i64: 2, 32>}, {pipeline_mode = #tpu.pipeline_mode<synchronous>, transform_indices = @transform_6, window_bounds = array<i64: 2, 32>}, {transform_indices = @transform_7, window_bounds = array<i64: 1, 256, 32>}]} {
    %c0 = arith.constant 0 : index
    %c0_0 = arith.constant 0 : index
    %0 = vector.load %arg3[%c0, %c0_0] : memref<288x32xf32, #tpu.memory_space<vmem>>, vector<288x32xf32>
    %c0_1 = arith.constant 0 : index
    %c0_2 = arith.constant 0 : index
    %1 = vector.load %arg4[%c0_1, %c0_2] : memref<1x32xf32, #tpu.memory_space<vmem>>, vector<1x32xf32>
    %c0_3 = arith.constant 0 : index
    %c0_4 = arith.constant 0 : index
    %2 = vector.load %arg5[%c0_3, %c0_4] : memref<1x32xf32, #tpu.memory_space<vmem>>, vector<1x32xf32>
    %c0_5 = arith.constant 0 : index
    %c0_6 = arith.constant 0 : index
    %3 = vector.load %arg6[%c0_5, %c0_6] : memref<2x32xf32, #tpu.memory_space<vmem>>, vector<2x32xf32>
    %c0_7 = arith.constant 0 : index
    %c0_8 = arith.constant 0 : index
    %4 = vector.load %arg7[%c0_7, %c0_8] : memref<2x32xf32, #tpu.memory_space<vmem>>, vector<2x32xf32>
    %c0_9 = arith.constant 0 : index
    %c0_10 = arith.constant 0 : index
    %c0_11 = arith.constant 0 : index
    %5 = vector.load %arg1[%c0_9, %c0_10, %c0_11] : memref<1x256x288xf32, #tpu.memory_space<vmem>>, vector<1x256x288xf32>
    %6 = vector.shape_cast %5 : vector<1x256x288xf32> to vector<256x288xf32>
    %cst = arith.constant dense<0.000000e+00> : vector<256x32xf32>
    %7 = tpu.matmul %6, %0, %cst {dimension_numbers = #tpu.dot_dimension_numbers<[1], [0], [0], [1], [0, 0, 1, 1], [], []>} : vector<256x288xf32>, vector<288x32xf32>, vector<256x32xf32> -> vector<256x32xf32>
    %8 = vector.broadcast %1 : vector<1x32xf32> to vector<256x32xf32>
    %9 = arith.mulf %7, %8 : vector<256x32xf32>
    %10 = vector.broadcast %2 : vector<1x32xf32> to vector<256x32xf32>
    %11 = arith.addf %9, %10 : vector<256x32xf32>
    %cst_12 = arith.constant dense<0.000000e+00> : vector<32xf32>
    %12 = vector.multi_reduction <add>, %11, %cst_12 [0] : vector<256x32xf32> to vector<32xf32>
    %13 = vector.shape_cast %12 : vector<32xf32> to vector<1x32xf32>
    %cst_13 = arith.constant 3.906250e-03 : f32
    %14 = vector.broadcast %cst_13 : f32 to vector<1x32xf32>
    %15 = arith.mulf %13, %14 : vector<1x32xf32>
    %cst_14 = arith.constant 0.000000e+00 : f32
    %16 = vector.broadcast %cst_14 : f32 to vector<1x32xf32>
    %17 = vector.extract_strided_slice %3 {offsets = [0, 0], sizes = [1, 32], strides = [1, 1]} : vector<2x32xf32> to vector<1x32xf32>
    %18 = arith.mulf %15, %17 : vector<1x32xf32>
    %cst_15 = arith.constant dense<0.000000e+00> : vector<1xf32>
    %19 = vector.multi_reduction <add>, %18, %cst_15 [1] : vector<1x32xf32> to vector<1xf32>
    %20 = vector.shape_cast %19 : vector<1xf32> to vector<1x1xf32>
    %cst_16 = arith.constant 0.000000e+00 : f32
    %21 = vector.broadcast %cst_16 : f32 to vector<1x1xf32>
    %22 = arith.maximumf %20, %21 : vector<1x1xf32>
    %23 = vector.extract_strided_slice %4 {offsets = [0, 0], sizes = [1, 32], strides = [1, 1]} : vector<2x32xf32> to vector<1x32xf32>
    %24 = vector.broadcast %22 : vector<1x1xf32> to vector<1x32xf32>
    %25 = arith.mulf %24, %23 : vector<1x32xf32>
    %26 = arith.addf %16, %25 : vector<1x32xf32>
    %27 = vector.extract_strided_slice %3 {offsets = [1, 0], sizes = [1, 32], strides = [1, 1]} : vector<2x32xf32> to vector<1x32xf32>
    %28 = arith.mulf %15, %27 : vector<1x32xf32>
    %cst_17 = arith.constant dense<0.000000e+00> : vector<1xf32>
    %29 = vector.multi_reduction <add>, %28, %cst_17 [1] : vector<1x32xf32> to vector<1xf32>
    %30 = vector.shape_cast %29 : vector<1xf32> to vector<1x1xf32>
    %cst_18 = arith.constant 0.000000e+00 : f32
    %31 = vector.broadcast %cst_18 : f32 to vector<1x1xf32>
    %32 = arith.maximumf %30, %31 : vector<1x1xf32>
    %33 = vector.extract_strided_slice %4 {offsets = [1, 0], sizes = [1, 32], strides = [1, 1]} : vector<2x32xf32> to vector<1x32xf32>
    %34 = vector.broadcast %32 : vector<1x1xf32> to vector<1x32xf32>
    %35 = arith.mulf %34, %33 : vector<1x32xf32>
    %36 = arith.addf %26, %35 : vector<1x32xf32>
    %37 = arith.negf %36 : vector<1x32xf32>
    %38 = math.exp %37 : vector<1x32xf32>
    %cst_19 = arith.constant 1.000000e+00 : f32
    %39 = vector.broadcast %cst_19 : f32 to vector<1x32xf32>
    %40 = arith.addf %39, %38 : vector<1x32xf32>
    %41 = arith.divf %39, %40 : vector<1x32xf32>
    %42 = vector.broadcast %41 : vector<1x32xf32> to vector<256x32xf32>
    %43 = arith.mulf %11, %42 : vector<256x32xf32>
    %c0_20 = arith.constant 0 : index
    %c0_21 = arith.constant 0 : index
    %c0_22 = arith.constant 0 : index
    %44 = vector.load %arg2[%c0_20, %c0_21, %c0_22] : memref<1x256x32xf32, #tpu.memory_space<vmem>>, vector<1x256x32xf32>
    %45 = vector.shape_cast %44 : vector<1x256x32xf32> to vector<256x32xf32>
    %46 = arith.addf %43, %45 : vector<256x32xf32>
    %cst_23 = arith.constant 0.000000e+00 : f32
    %47 = vector.broadcast %cst_23 : f32 to vector<256x32xf32>
    %48 = arith.maximumf %46, %47 : vector<256x32xf32>
    %c0_24 = arith.constant 0 : index
    %c0_25 = arith.constant 0 : index
    %c0_26 = arith.constant 0 : index
    %49 = vector.load %arg8[%c0_24, %c0_25, %c0_26] : memref<1x256x32xf32, #tpu.memory_space<vmem>>, vector<1x256x32xf32>
    %50 = vector.shape_cast %49 : vector<1x256x32xf32> to vector<256x32xf32>
    %51 = vector.shape_cast %48 : vector<256x32xf32> to vector<1x256x32xf32>
    tpu.vector_store %arg8[%c0_24, %c0_25, %c0_26], %51 {strides = array<i32>} : memref<1x256x32xf32, #tpu.memory_space<vmem>>, vector<1x256x32xf32>,
    return
  }
  func.func @transform_0(%arg0: i32) -> (i32, i32, i32) {
    %c0_i32 = arith.constant 0 : i32
    %c0_i32_0 = arith.constant 0 : i32
    %c0_i32_1 = arith.constant 0 : i32
    return %arg0, %c0_i32, %c0_i32_0 : i32, i32, i32
  }
  func.func @transform_1(%arg0: i32) -> (i32, i32, i32) {
    %c0_i32 = arith.constant 0 : i32
    %c0_i32_0 = arith.constant 0 : i32
    %c0_i32_1 = arith.constant 0 : i32
    return %arg0, %c0_i32, %c0_i32_0 : i32, i32, i32
  }
  func.func @transform_2(%arg0: i32) -> (i32, i32) {
    %c0_i32 = arith.constant 0 : i32
    %c0_i32_0 = arith.constant 0 : i32
    %c0_i32_1 = arith.constant 0 : i32
    return %c0_i32, %c0_i32_0 : i32, i32
  }
  func.func @transform_3(%arg0: i32) -> (i32, i32) {
    %c0_i32 = arith.constant 0 : i32
    %c0_i32_0 = arith.constant 0 : i32
    %c0_i32_1 = arith.constant 0 : i32
    return %c0_i32, %c0_i32_0 : i32, i32
  }
  func.func @transform_4(%arg0: i32) -> (i32, i32) {
    %c0_i32 = arith.constant 0 : i32
    %c0_i32_0 = arith.constant 0 : i32
    %c0_i32_1 = arith.constant 0 : i32
    return %c0_i32, %c0_i32_0 : i32, i32
  }
  func.func @transform_5(%arg0: i32) -> (i32, i32) {
    %c0_i32 = arith.constant 0 : i32
    %c0_i32_0 = arith.constant 0 : i32
    %c0_i32_1 = arith.constant 0 : i32
    return %c0_i32, %c0_i32_0 : i32, i32
  }
  func.func @transform_6(%arg0: i32) -> (i32, i32) {
    %c0_i32 = arith.constant 0 : i32
    %c0_i32_0 = arith.constant 0 : i32
    %c0_i32_1 = arith.constant 0 : i32
    return %c0_i32, %c0_i32_0 : i32, i32
  }
  func.func @transform_7(%arg0: i32) -> (i32, i32, i32) {
    %c0_i32 = arith.constant 0 : i32
    %c0_i32_0 = arith.constant 0 : i32
    %c0_i32_1 = arith.constant 0 : i32
    return %arg0, %c0_i32, %c0_i32_0 : i32, i32, i32
  }
}

</mosaic_0001>

<bundles_post_ra>
// kernel: basic_block_forward.2
= control target key start
LH: loop header
LB: loop body
LE: loop exit
PB: predicated region body
PF: predicated region fallthrough
CT: control target
= control target key end

     0   :  { %s1319_s15 = smov 0   ;;  %s1813_s0 = inlined_call_operand.vmem [shape: f32[2,256,288], index: 0, kind: input, shape index: {}]   ;;  %s1814_s1 = inlined_call_operand.vmem [shape: f32[288,32], index: 1, kind: input, shape index: {}]   ;;  %s1815_s2 = inlined_call_operand.vmem [shape: f32[1,32], index: 2, kind: input, shape index: {}]   ;;  %s1816_s3 = inlined_call_operand.vmem [shape: f32[1,32], index: 3, kind: input, shape index: {}]   ;;  %s1817_s4 = inlined_call_operand.vmem [shape: f32[2,256,32], index: 4, kind: output, shape index: {}]  }
   0x1 LB: > { %s1074_s16 = sadd.s32 4294967295, %s1291_s15   ;;  %p1078_p0 = scmp.ge.s32.totalorder %s1291_s15, 1  ;;  %s1291_s15 = sphi %s1319_s15, %s14_s15  }
   0x2   : > { %p162_p1 = scmp.lt.s32.totalorder %s1291_s15, 3 }
   0x4   : > { %p163_p2 = pnand %p1078_p0, %p162_p1 }
   0x5   : > { %p188_p3 = scmp.lt.s32.totalorder (!%p163_p2), %s1074_s16, 1 }
   0x6   : > { %166 = sbr.rel (%p163_p2) target bundleno = 374 (0x176), region = 36 }
   0xb   : > { %v213_v0 = vld [vmem:[%s1814_s1 + $0x78] sm:$0xff]  ;;  %v1293_v1 = vmov 0.0   ;;  %v212_v2 = vld [vmem:[%s1814_s1 + $0x70] sm:$0xff]  ;;  %v211_v3 = vld [vmem:[%s1814_s1 + $0x68] sm:$0xff]  ;;  %s1819_s16 = smov (!%p188_p3, %s1074_s16), 1  ;;  %vm332_vm0 = vcmask 261120  }
   0xc   : > { %429 = vmatprep.subr.mxu0 %v1293_v1  ;;  %1211 = vmatprep.subr.mxu1 %v1293_v1  ;;  %v210_v4 = vld [vmem:[%s1814_s1 + $0x60] sm:$0xff]  ;;  %v209_v5 = vld [vmem:[%s1814_s1 + $0x58] sm:$0xff]  ;;  %v208_v6 = vld [vmem:[%s1814_s1 + $0x50] sm:$0xff]  ;;  %s1275_s27 = smul.u32 768, %s1819_s16  ;;  %s1118_s25 = sshll.u32 %s1819_s16, 8 }
   0xd   : > { %430 = vmatpush1.msra.mxu0 %v213_v0  ;;  %1243 = vmatpush1.msra.mxu1 %v213_v0  ;;  %v207_v7 = vld [vmem:[%s1814_s1 + $0x48] sm:$0xff]  ;;  %v206_v8 = vld [vmem:[%s1814_s1 + $0x40] sm:$0xff]  ;;  %v205_v9 = vld [vmem:[%s1814_s1 + $0x38] sm:$0xff]  ;;  %s1674_s28 = scalar_lea.vmem %s1817_s4, %s1118_s25 }
   0xe   : > { %431 = vmatprep.subr.mxu0 %v1293_v1  ;;  %1212 = vmatprep.subr.mxu1 %v1293_v1  ;;  %v204_v10 = vld [vmem:[%s1814_s1 + $0x30] sm:$0xff]  ;;  %v203_v11 = vld [vmem:[%s1814_s1 + $0x28] sm:$0xff]  ;;  %v202_v12 = vld [vmem:[%s1814_s1 + $0x20] sm:$0xff]  ;;  %s1490_s8 = scalar_lea.vmem %s1813_s0, %s1275_s27 }
   0xf   : > { %432 = vmatpush1.msra.mxu0 %v212_v2  ;;  %1244 = vmatpush1.msra.mxu1 %v212_v2  ;;  %v201_v13 = vld [vmem:[%s1814_s1 + $0x18] sm:$0xff]  ;;  %v200_v14 = vld [vmem:[%s1814_s1 + $0x10] sm:$0xff]  ;;  %v199_v15 = vld [vmem:[%s1814_s1 + $0x8] sm:$0xff] }
  0x10   : > { %433 = vmatprep.subr.mxu0 %v1293_v1  ;;  %1213 = vmatprep.subr.mxu1 %v1293_v1  ;;  %v198_v16 = vld [vmem:[%s1814_s1] sm:$0xff]  ;;  %v229_v17 = vld [vmem:[%s1814_s1 + $0xf8] sm:$0xff]  ;;  %v228_v18 = vld [vmem:[%s1814_s1 + $0xf0] sm:$0xff] }
  0x11   : > { %434 = vmatpush1.msra.mxu0 %v211_v3  ;;  %1245 = vmatpush1.msra.mxu1 %v211_v3  ;;  %v227_v19 = vld [vmem:[%s1814_s1 + $0xe8] sm:$0xff]  ;;  %v226_v20 = vld [vmem:[%s1814_s1 + $0xe0] sm:$0xff]  ;;  %v225_v21 = vld [vmem:[%s1814_s1 + $0xd8] sm:$0xff] }
  0x12   : > { %435 = vmatprep.subr.mxu0 %v1293_v1  ;;  %1214 = vmatprep.subr.mxu1 %v1293_v1  ;;  %v224_v22 = vld [vmem:[%s1814_s1 + $0xd0] sm:$0xff]  ;;  %v223_v23 = vld [vmem:[%s1814_s1 + $0xc8] sm:$0xff]  ;;  %v222_v24 = vld [vmem:[%s1814_s1 + $0xc0] sm:$0xff] }
  0x13   : > { %436 = vmatpush1.msra.mxu0 %v210_v4  ;;  %1246 = vmatpush1.msra.mxu1 %v210_v4  ;;  %v221_v25 = vld [vmem:[%s1814_s1 + $0xb8] sm:$0xff]  ;;  %v220_v26 = vld [vmem:[%s1814_s1 + $0xb0] sm:$0xff]  ;;  %v219_v27 = vld [vmem:[%s1814_s1 + $0xa8] sm:$0xff] }
  0x14   : > { %437 = vmatprep.subr.mxu0 %v1293_v1  ;;  %1215 = vmatprep.subr.mxu1 %v1293_v1  ;;  %v218_v28 = vld [vmem:[%s1814_s1 + $0xa0] sm:$0xff]  ;;  %v217_v29 = vld [vmem:[%s1814_s1 + $0x98] sm:$0xff]  ;;  %v216_v30 = vld [vmem:[%s1814_s1 + $0x90] sm:$0xff] }
  0x15   : > { %438 = vmatpush1.msra.mxu0 %v209_v5  ;;  %1247 = vmatpush1.msra.mxu1 %v209_v5  ;;  %v215_v31 = vld [vmem:[%s1814_s1 + $0x88] sm:$0xff]  ;;  %v214_v32 = vld [vmem:[%s1814_s1 + $0x80] sm:$0xff]  ;;  %v233_v37 = vld [vmem:[%s1814_s1 + $0x118] sm:$0xff] }
  0x16   : > { %439 = vmatprep.subr.mxu0 %v1293_v1  ;;  %1216 = vmatprep.subr.mxu1 %v1293_v1  ;;  %v237_v33 = vld [vmem:[%s1490_s8 + $0x8] sm:$0xff]  ;;  %v236_v35 = vld [vmem:[%s1490_s8] sm:$0xff]  ;;  %v232_v40 = vld [vmem:[%s1814_s1 + $0x110] sm:$0xff] }
  0x17   : > { %440 = vmatpush1.msra.mxu0 %v208_v6  ;;  %1248 = vmatpush1.msra.mxu1 %v208_v6  ;;  %v309_v34 = vld [vmem:[%s1490_s8 + $0x248] sm:$0xff]  ;;  %v308_v36 = vld [vmem:[%s1490_s8 + $0x240] sm:$0xff]  ;;  %v239_v41 = vld [vmem:[%s1490_s8 + $0x18] sm:$0xff] }
  0x18   : > { %441 = vmatprep.subr.mxu0 %v1293_v1  ;;  %1217 = vmatprep.subr.mxu1 %v1293_v1  ;;  %v240_v38 = vld [vmem:[%s1490_s8 + $0x20] sm:$0xff]  ;;  %v311_v42 = vld [vmem:[%s1490_s8 + $0x258] sm:$0xff]  ;;  %v231_v45 = vld [vmem:[%s1814_s1 + $0x108] sm:$0xff] }
  0x19   : > { %442 = vmatpush1.msra.mxu0 %v207_v7  ;;  %1249 = vmatpush1.msra.mxu1 %v207_v7  ;;  %v312_v39 = vld [vmem:[%s1490_s8 + $0x260] sm:$0xff]  ;;  %v243_v43 = vld [vmem:[%s1490_s8 + $0x38] sm:$0xff]  ;;  %v242_v46 = vld [vmem:[%s1490_s8 + $0x30] sm:$0xff] }
  0x1a   : > { %443 = vmatprep.subr.mxu0 %v1293_v1  ;;  %1218 = vmatprep.subr.mxu1 %v1293_v1  ;;  %v315_v44 = vld [vmem:[%s1490_s8 + $0x278] sm:$0xff]  ;;  %v314_v47 = vld [vmem:[%s1490_s8 + $0x270] sm:$0xff]  ;;  %v230_v50 = vld [vmem:[%s1814_s1 + $0x100] sm:$0xff] }
  0x1b   : > { %444 = vmatpush1.msra.mxu0 %v206_v8  ;;  %1250 = vmatpush1.msra.mxu1 %v206_v8  ;;  %v246_v48 = vld [vmem:[%s1490_s8 + $0x50] sm:$0xff]  ;;  %v245_v51 = vld [vmem:[%s1490_s8 + $0x48] sm:$0xff]  ;;  %v248_v55 = vld [vmem:[%s1490_s8 + $0x60] sm:$0xff] }
  0x1c   : > { %445 = vmatprep.subr.mxu0 %v1293_v1  ;;  %1219 = vmatprep.subr.mxu1 %v1293_v1  ;;  %v318_v49 = vld [vmem:[%s1490_s8 + $0x290] sm:$0xff]  ;;  %v317_v52 = vld [vmem:[%s1490_s8 + $0x288] sm:$0xff]  ;;  %v320_v56 = vld [vmem:[%s1490_s8 + $0x2a0] sm:$0xff] }
  0x1d   : > { %446 = vmatpush1.msra.mxu0 %v205_v9  ;;  %1251 = vmatpush1.msra.mxu1 %v205_v9  ;;  %v249_v53 = vld [vmem:[%s1490_s8 + $0x68] sm:$0xff]  ;;  %v252_v57 = vld [vmem:[%s1490_s8 + $0x80] sm:$0xff]  ;;  %v251_v59 = vld [vmem:[%s1490_s8 + $0x78] sm:$0xff] }
  0x1e   : > { %447 = vmatprep.subr.mxu0 %v1293_v1  ;;  %1220 = vmatprep.subr.mxu1 %v1293_v1  ;;  %v321_v54 = vld [vmem:[%s1490_s8 + $0x2a8] sm:$0xff]  ;;  %v324_v58 = vld [vmem:[%s1490_s8 + $0x2c0] sm:$0xff]  ;;  %v323_v60 = vld [vmem:[%s1490_s8 + $0x2b8] sm:$0xff] }
  0x1f   : > { %448 = vmatpush1.msra.mxu0 %v204_v10  ;;  %1252 = vmatpush1.msra.mxu1 %v204_v10  ;;  %v255_v61 = vld [vmem:[%s1490_s8 + $0x98] sm:$0xff]  ;;  %v254_v63 = vld [vmem:[%s1490_s8 + $0x90] sm:$0xff]  ;;  %v257_v3 = vld [vmem:[%s1490_s8 + $0xa8] sm:$0xff] }
  0x20   : > { %449 = vmatprep.subr.mxu0 %v1293_v1  ;;  %1221 = vmatprep.subr.mxu1 %v1293_v1  ;;  %v327_v62 = vld [vmem:[%s1490_s8 + $0x2d8] sm:$0xff]  ;;  %v326_v0 = vld [vmem:[%s1490_s8 + $0x2d0] sm:$0xff]  ;;  %v329_v4 = vld [vmem:[%s1490_s8 + $0x2e8] sm:$0xff] }
  0x21   : > { %450 = vmatpush1.msra.mxu0 %v203_v11  ;;  %1253 = vmatpush1.msra.mxu1 %v203_v11  ;;  %v330_v2 = vld [vmem:[%s1490_s8 + $0x2f0] sm:$0xff]  ;;  %v261_v5 = vld [vmem:[%s1490_s8 + $0xc8] sm:$0xff]  ;;  %v260_v7 = vld [vmem:[%s1490_s8 + $0xc0] sm:$0xff] }
  0x22   : > { %451 = vmatprep.subr.mxu0 %v1293_v1  ;;  %1222 = vmatprep.subr.mxu1 %v1293_v1  ;;  %v238_v6 = vld [vmem:[%s1490_s8 + $0x10] sm:$0xff]  ;;  %v241_v8 = vld [vmem:[%s1490_s8 + $0x28] sm:$0xff]  ;;  %v264_v9 = vld [vmem:[%s1490_s8 + $0xe0] sm:$0xff] }
  0x23   : > { %452 = vmatpush1.msra.mxu0 %v202_v12  ;;  %1254 = vmatpush1.msra.mxu1 %v202_v12  ;;  %v244_v10 = vld [vmem:[%s1490_s8 + $0x40] sm:$0xff]  ;;  %v263_v11 = vld [vmem:[%s1490_s8 + $0xd8] sm:$0xff] }
  0x24   : > { %453 = vmatprep.subr.mxu0 %v1293_v1  ;;  %1223 = vmatprep.subr.mxu1 %v1293_v1  ;;  %v247_v12 = vld [vmem:[%s1490_s8 + $0x58] sm:$0xff] }
  0x25   : > { %454 = vmatpush1.msra.mxu0 %v201_v13  ;;  %1255 = vmatpush1.msra.mxu1 %v201_v13  ;;  %v267_v13 = vld [vmem:[%s1490_s8 + $0xf8] sm:$0xff] }
  0x26   : > { %455 = vmatprep.subr.mxu0 %v1293_v1  ;;  %1224 = vmatprep.subr.mxu1 %v1293_v1 }
  0x27   : > { %456 = vmatpush1.msra.mxu0 %v200_v14  ;;  %1256 = vmatpush1.msra.mxu1 %v200_v14  ;;  %v250_v14 = vld [vmem:[%s1490_s8 + $0x70] sm:$0xff] }
  0x28   : > { %457 = vmatprep.subr.mxu0 %v1293_v1  ;;  %1225 = vmatprep.subr.mxu1 %v1293_v1 }
  0x29   : > { %458 = vmatpush1.msra.mxu0 %v199_v15  ;;  %1257 = vmatpush1.msra.mxu1 %v199_v15  ;;  %v266_v15 = vld [vmem:[%s1490_s8 + $0xf0] sm:$0xff] }
  0x2a   : > { %459 = vmatprep.subr.mxu0 %v1293_v1  ;;  %1226 = vmatprep.subr.mxu1 %v1293_v1 }
  0x2b   : > { %460 = vmatpush1.msra.mxu0 %v198_v16  ;;  %1258 = vmatpush1.msra.mxu1 %v198_v16  ;;  %v253_v16 = vld [vmem:[%s1490_s8 + $0x88] sm:$0xff] }
  0x2c   : > { %461 = vmatprep.subr.mxu0 %v1293_v1  ;;  %1227 = vmatprep.subr.mxu1 %v1293_v1 }
  0x2d   : > { %462 = vmatpush2.msra.mxu0 %v229_v17  ;;  %1259 = vmatpush2.msra.mxu1 %v229_v17  ;;  %v270_v17 = vld [vmem:[%s1490_s8 + $0x110] sm:$0xff] }
  0x2e   : > { %463 = vmatprep.subr.mxu0 %v1293_v1  ;;  %1228 = vmatprep.subr.mxu1 %v1293_v1 }
  0x2f   : > { %464 = vmatpush2.msra.mxu0 %v228_v18  ;;  %1260 = vmatpush2.msra.mxu1 %v228_v18  ;;  %v256_v18 = vld [vmem:[%s1490_s8 + $0xa0] sm:$0xff] }
  0x30   : > { %465 = vmatprep.subr.mxu0 %v1293_v1  ;;  %1229 = vmatprep.subr.mxu1 %v1293_v1 }
  0x31   : > { %466 = vmatpush2.msra.mxu0 %v227_v19  ;;  %1261 = vmatpush2.msra.mxu1 %v227_v19  ;;  %v269_v19 = vld [vmem:[%s1490_s8 + $0x108] sm:$0xff] }
  0x32   : > { %467 = vmatprep.subr.mxu0 %v1293_v1  ;;  %1230 = vmatprep.subr.mxu1 %v1293_v1 }
  0x33   : > { %468 = vmatpush2.msra.mxu0 %v226_v20  ;;  %1262 = vmatpush2.msra.mxu1 %v226_v20  ;;  %v259_v20 = vld [vmem:[%s1490_s8 + $0xb8] sm:$0xff] }
  0x34   : > { %469 = vmatprep.subr.mxu0 %v1293_v1  ;;  %1231 = vmatprep.subr.mxu1 %v1293_v1 }
  0x35   : > { %470 = vmatpush2.msra.mxu0 %v225_v21  ;;  %1263 = vmatpush2.msra.mxu1 %v225_v21  ;;  %v273_v21 = vld [vmem:[%s1490_s8 + $0x128] sm:$0xff] }
  0x36   : > { %471 = vmatprep.subr.mxu0 %v1293_v1  ;;  %1232 = vmatprep.subr.mxu1 %v1293_v1 }
  0x37   : > { %472 = vmatpush2.msra.mxu0 %v224_v22  ;;  %1264 = vmatpush2.msra.mxu1 %v224_v22  ;;  %v262_v22 = vld [vmem:[%s1490_s8 + $0xd0] sm:$0xff] }
  0x38   : > { %473 = vmatprep.subr.mxu0 %v1293_v1  ;;  %1233 = vmatprep.subr.mxu1 %v1293_v1 }
  0x39   : > { %474 = vmatpush2.msra.mxu0 %v223_v23  ;;  %1265 = vmatpush2.msra.mxu1 %v223_v23  ;;  %v272_v23 = vld [vmem:[%s1490_s8 + $0x120] sm:$0xff] }
  0x3a   : > { %475 = vmatprep.subr.mxu0 %v1293_v1  ;;  %1234 = vmatprep.subr.mxu1 %v1293_v1 }
  0x3b   : > { %476 = vmatpush2.msra.mxu0 %v222_v24  ;;  %1266 = vmatpush2.msra.mxu1 %v222_v24  ;;  %v265_v24 = vld [vmem:[%s1490_s8 + $0xe8] sm:$0xff] }
  0x3c   : > { %477 = vmatprep.subr.mxu0 %v1293_v1  ;;  %1235 = vmatprep.subr.mxu1 %v1293_v1 }
  0x3d   : > { %478 = vmatpush2.msra.mxu0 %v221_v25  ;;  %1267 = vmatpush2.msra.mxu1 %v221_v25  ;;  %v276_v25 = vld [vmem:[%s1490_s8 + $0x140] sm:$0xff] }
  0x3e   : > { %479 = vmatprep.subr.mxu0 %v1293_v1  ;;  %1236 = vmatprep.subr.mxu1 %v1293_v1 }
  0x3f   : > { %480 = vmatpush2.msra.mxu0 %v220_v26  ;;  %1268 = vmatpush2.msra.mxu1 %v220_v26  ;;  %v268_v26 = vld [vmem:[%s1490_s8 + $0x100] sm:$0xff] }
  0x40   : > { %481 = vmatprep.subr.mxu0 %v1293_v1  ;;  %1237 = vmatprep.subr.mxu1 %v1293_v1 }
  0x41   : > { %482 = vmatpush2.msra.mxu0 %v219_v27  ;;  %1269 = vmatpush2.msra.mxu1 %v219_v27  ;;  %v275_v27 = vld [vmem:[%s1490_s8 + $0x138] sm:$0xff] }
  0x42   : > { %483 = vmatprep.subr.mxu0 %v1293_v1  ;;  %1238 = vmatprep.subr.mxu1 %v1293_v1 }
  0x43   : > { %484 = vmatpush2.msra.mxu0 %v218_v28  ;;  %1270 = vmatpush2.msra.mxu1 %v218_v28  ;;  %v271_v28 = vld [vmem:[%s1490_s8 + $0x118] sm:$0xff] }
  0x44   : > { %485 = vmatprep.subr.mxu0 %v1293_v1  ;;  %1239 = vmatprep.subr.mxu1 %v1293_v1 }
  0x45   : > { %486 = vmatpush2.msra.mxu0 %v217_v29  ;;  %1271 = vmatpush2.msra.mxu1 %v217_v29  ;;  %v279_v29 = vld [vmem:[%s1490_s8 + $0x158] sm:$0xff] }
  0x46   : > { %487 = vmatprep.subr.mxu0 %v1293_v1  ;;  %1240 = vmatprep.subr.mxu1 %v1293_v1 }
  0x47   : > { %488 = vmatpush2.msra.mxu0 %v216_v30  ;;  %1272 = vmatpush2.msra.mxu1 %v216_v30  ;;  %v274_v30 = vld [vmem:[%s1490_s8 + $0x130] sm:$0xff] }
  0x48   : > { %489 = vmatprep.subr.mxu0 %v1293_v1  ;;  %1241 = vmatprep.subr.mxu1 %v1293_v1 }
  0x49   : > { %490 = vmatpush2.msra.mxu0 %v215_v31  ;;  %1273 = vmatpush2.msra.mxu1 %v215_v31  ;;  %v278_v31 = vld [vmem:[%s1490_s8 + $0x150] sm:$0xff] }
  0x4a   : > { %491 = vmatprep.subr.mxu0 %v1293_v1  ;;  %1242 = vmatprep.subr.mxu1 %v1293_v1  ;;  %v258_v1 = vld [vmem:[%s1490_s8 + $0xb0] sm:$0xff] }
  0x4b   : > { %492 = vmatpush2.msra.mxu0 %v214_v32  ;;  %1274 = vmatpush2.msra.mxu1 %v214_v32  ;;  %v277_v32 = vld [vmem:[%s1490_s8 + $0x148] sm:$0xff] }
  0x4c   : > { %493 = vmatprep.mubr.f32.mxu0 %v237_v33  ;;  %613 = vmatprep.mubr.f32.mxu1 %v309_v34  ;;  %v282_v33 = vld [vmem:[%s1490_s8 + $0x170] sm:$0xff]  ;;  %v280_v34 = vld [vmem:[%s1490_s8 + $0x160] sm:$0xff] }
  0x4d   : > { %494 = vmatmul.mubr.f32.vlgmr.msra.gmra.mxu0 %v236_v35  ;;  %614 = vmatmul.mubr.f32.vlgmr.msra.gmra.mxu1 %v308_v36  ;;  %v281_v35 = vld [vmem:[%s1490_s8 + $0x168] sm:$0xff]  ;;  %v283_v36 = vld [vmem:[%s1490_s8 + $0x178] sm:$0xff] }
  0x4e   : > { %1155 = vmatprep.subr.mxu1 %v233_v37  ;;  %498 = vmatprep.mubr.f32.mxu0 %v240_v38  ;;  %v286_v38 = vld [vmem:[%s1490_s8 + $0x190] sm:$0xff] }
  0x4f   : > { %1156 = vmatpush3.msra.mxu1 %v233_v37  ;;  %618 = vmatprep.mubr.f32.mxu1 %v312_v39  ;;  %v285_v37 = vld [vmem:[%s1490_s8 + $0x188] sm:$0xff]  ;;  %v284_v39 = vld [vmem:[%s1490_s8 + $0x180] sm:$0xff] }
  0x50   : > { %1157 = vmatprep.subr.mxu1 %v232_v40 }
  0x51   : > { %499 = vmatmul.mubr.f32.gmra.mxu0 %v239_v41  ;;  %619 = vmatmul.mubr.f32.gmra.mxu1 %v311_v42  ;;  %v288_v41 = vld [vmem:[%s1490_s8 + $0x1a0] sm:$0xff] }
  0x52   : > { %503 = vmatprep.mubr.f32.mxu0 %v243_v43  ;;  %623 = vmatprep.mubr.f32.mxu1 %v315_v44  ;;  %v292_v42 = vld [vmem:[%s1490_s8 + $0x1c0] sm:$0xff]  ;;  %v287_v43 = vld [vmem:[%s1490_s8 + $0x198] sm:$0xff] }
  0x53   : > { %1158 = vmatpush3.msra.mxu1 %v232_v40  ;;  %v289_v40 = vld [vmem:[%s1490_s8 + $0x1a8] sm:$0xff]  ;;  %v295_v44 = vld [vmem:[%s1490_s8 + $0x1d8] sm:$0xff] }
  0x54   : > { %1159 = vmatprep.subr.mxu1 %v231_v45 }
  0x55   : > { %504 = vmatmul.mubr.f32.gmra.mxu0 %v242_v46  ;;  %624 = vmatmul.mubr.f32.gmra.mxu1 %v314_v47  ;;  %v298_v46 = vld [vmem:[%s1490_s8 + $0x1f0] sm:$0xff] }
  0x56   : > { %508 = vmatprep.mubr.f32.mxu0 %v246_v48  ;;  %628 = vmatprep.mubr.f32.mxu1 %v318_v49  ;;  %v290_v47 = vld [vmem:[%s1490_s8 + $0x1b0] sm:$0xff]  ;;  %v301_v48 = vld [vmem:[%s1490_s8 + $0x208] sm:$0xff] }
  0x57   : > { %1160 = vmatpush3.msra.mxu1 %v231_v45  ;;  %v291_v45 = vld [vmem:[%s1490_s8 + $0x1b8] sm:$0xff]  ;;  %v294_v49 = vld [vmem:[%s1490_s8 + $0x1d0] sm:$0xff] }
  0x58   : > { %1161 = vmatprep.subr.mxu1 %v230_v50 }
  0x59   : > { %509 = vmatmul.mubr.f32.gmra.mxu0 %v245_v51  ;;  %629 = vmatmul.mubr.f32.gmra.mxu1 %v317_v52  ;;  %v293_v51 = vld [vmem:[%s1490_s8 + $0x1c8] sm:$0xff]  ;;  %v307_v52 = vld [vmem:[%s1490_s8 + $0x238] sm:$0xff] }
  0x5a   : > { %513 = vmatprep.mubr.f32.mxu0 %v249_v53  ;;  %633 = vmatprep.mubr.f32.mxu1 %v321_v54  ;;  %v297_v53 = vld [vmem:[%s1490_s8 + $0x1e8] sm:$0xff]  ;;  %v310_v54 = vld [vmem:[%s1490_s8 + $0x250] sm:$0xff] }
  0x5b   : > { %1162 = vmatpush3.msra.mxu1 %v230_v50  ;;  %v304_v50 = vld [vmem:[%s1490_s8 + $0x220] sm:$0xff] }
  0x5d   : > { %514 = vmatmul.mubr.f32.gmra.mxu0 %v248_v55  ;;  %634 = vmatmul.mubr.f32.gmra.mxu1 %v320_v56  ;;  %v296_v55 = vld [vmem:[%s1490_s8 + $0x1e0] sm:$0xff]  ;;  %v313_v56 = vld [vmem:[%s1490_s8 + $0x268] sm:$0xff] }
  0x5e   : > { %518 = vmatprep.mubr.f32.mxu0 %v252_v57  ;;  %638 = vmatprep.mubr.f32.mxu1 %v324_v58  ;;  %v300_v57 = vld [vmem:[%s1490_s8 + $0x200] sm:$0xff] }
  0x5f   : > { %v316_v58 = vld [vmem:[%s1490_s8 + $0x280] sm:$0xff] }
  0x61   : > { %519 = vmatmul.mubr.f32.gmra.mxu0 %v251_v59  ;;  %639 = vmatmul.mubr.f32.gmra.mxu1 %v323_v60  ;;  %v299_v59 = vld [vmem:[%s1490_s8 + $0x1f8] sm:$0xff] }
  0x62   : > { %523 = vmatprep.mubr.f32.mxu0 %v255_v61  ;;  %643 = vmatprep.mubr.f32.mxu1 %v327_v62  ;;  %v319_v60 = vld [vmem:[%s1490_s8 + $0x298] sm:$0xff]  ;;  %v322_v62 = vld [vmem:[%s1490_s8 + $0x2b0] sm:$0xff] }
  0x63   : > { %v303_v61 = vld [vmem:[%s1490_s8 + $0x218] sm:$0xff] }
  0x65   : > { %524 = vmatmul.mubr.f32.gmra.mxu0 %v254_v63  ;;  %644 = vmatmul.mubr.f32.gmra.mxu1 %v326_v0  ;;  %v302_v63 = vld [vmem:[%s1490_s8 + $0x210] sm:$0xff]  ;;  %v325_v0 = vld [vmem:[%s1490_s8 + $0x2c8] sm:$0xff] }
  0x66   : > { %528 = vmatprep.mubr.f32.mxu0 %v258_v1  ;;  %648 = vmatprep.mubr.f32.mxu1 %v330_v2  ;;  %v306_v1 = vld [vmem:[%s1490_s8 + $0x230] sm:$0xff]  ;;  %v328_v2 = vld [vmem:[%s1490_s8 + $0x2e0] sm:$0xff] }
  0x69   : > { %529 = vmatmul.mubr.f32.gmra.mxu0 %v257_v3  ;;  %649 = vmatmul.mubr.f32.gmra.mxu1 %v329_v4  ;;  %v305_v3 = vld [vmem:[%s1490_s8 + $0x228] sm:$0xff]  ;;  %v331_v4 = vld [vmem:[%s1490_s8 + $0x2f8] sm:$0xff] }
  0x6a   : > { %533 = vmatprep.mubr.f32.mxu0 %v261_v5  ;;  %1163 = vmatprep.mubr.msk.f32.mxu1 %vm332_vm0, %v238_v6 }
  0x6d   : > { %534 = vmatmul.mubr.f32.gmra.mxu0 %v260_v7  ;;  %1164 = vmatmul.mubr.msk.f32.vlgmr.msra.gmra.mxu1 %vm332_vm0, %v241_v8 }
  0x6e   : > { %538 = vmatprep.mubr.f32.mxu0 %v264_v9  ;;  %1166 = vmatprep.mubr.msk.f32.mxu1 %vm332_vm0, %v244_v10 }
  0x71   : > { %539 = vmatmul.mubr.f32.gmra.mxu0 %v263_v11  ;;  %1167 = vmatmul.mubr.msk.f32.gmra.mxu1 %vm332_vm0, %v247_v12 }
  0x72   : > { %543 = vmatprep.mubr.f32.mxu0 %v267_v13  ;;  %1169 = vmatprep.mubr.msk.f32.mxu1 %vm332_vm0, %v250_v14 }
  0x75   : > { %544 = vmatmul.mubr.f32.gmra.mxu0 %v266_v15  ;;  %1170 = vmatmul.mubr.msk.f32.gmra.mxu1 %vm332_vm0, %v253_v16 }
  0x76   : > { %548 = vmatprep.mubr.f32.mxu0 %v270_v17  ;;  %1172 = vmatprep.mubr.msk.f32.mxu1 %vm332_vm0, %v256_v18 }
  0x79   : > { %549 = vmatmul.mubr.f32.gmra.mxu0 %v269_v19  ;;  %1173 = vmatmul.mubr.msk.f32.gmra.mxu1 %vm332_vm0, %v259_v20 }
  0x7a   : > { %553 = vmatprep.mubr.f32.mxu0 %v273_v21  ;;  %1175 = vmatprep.mubr.msk.f32.mxu1 %vm332_vm0, %v262_v22 }
  0x7d   : > { %554 = vmatmul.mubr.f32.gmra.mxu0 %v272_v23  ;;  %1176 = vmatmul.mubr.msk.f32.gmra.mxu1 %vm332_vm0, %v265_v24 }
  0x7e   : > { %558 = vmatprep.mubr.f32.mxu0 %v276_v25  ;;  %1178 = vmatprep.mubr.msk.f32.mxu1 %vm332_vm0, %v268_v26 }
  0x81   : > { %559 = vmatmul.mubr.f32.gmra.mxu0 %v275_v27  ;;  %1179 = vmatmul.mubr.msk.f32.gmra.mxu1 %vm332_vm0, %v271_v28 }
  0x82   : > { %563 = vmatprep.mubr.f32.mxu0 %v279_v29  ;;  %1181 = vmatprep.mubr.msk.f32.mxu1 %vm332_vm0, %v274_v30 }
  0x85   : > { %564 = vmatmul.mubr.f32.gmra.mxu0 %v278_v31  ;;  %1182 = vmatmul.mubr.msk.f32.gmra.mxu1 %vm332_vm0, %v277_v32 }
  0x86   : > { %568 = vmatprep.mubr.f32.mxu0 %v282_v33  ;;  %1184 = vmatprep.mubr.msk.f32.mxu1 %vm332_vm0, %v280_v34 }
  0x89   : > { %569 = vmatmul.mubr.f32.gmra.mxu0 %v281_v35  ;;  %1185 = vmatmul.mubr.msk.f32.gmra.mxu1 %vm332_vm0, %v283_v36 }
  0x8a   : > { %573 = vmatprep.mubr.f32.mxu0 %v285_v37  ;;  %1187 = vmatprep.mubr.msk.f32.mxu1 %vm332_vm0, %v286_v38  ;;  %v1660_v38 = vld [vmem:[%s1815_s2] ss:$0 sm:$0xff] }
  0x8d   : > { %574 = vmatmul.mubr.f32.gmra.mxu0 %v284_v39  ;;  %1188 = vmatmul.mubr.msk.f32.gmra.mxu1 %vm332_vm0, %v289_v40 }
  0x8e   : > { %578 = vmatprep.mubr.f32.mxu0 %v288_v41  ;;  %1190 = vmatprep.mubr.msk.f32.mxu1 %vm332_vm0, %v292_v42  ;;  %v1665_v41 = vld [vmem:[%s1816_s3] ss:$0 sm:$0xff] }
  0x91   : > { %579 = vmatmul.mubr.f32.gmra.mxu0 %v287_v43  ;;  %1191 = vmatmul.mubr.msk.f32.gmra.mxu1 %vm332_vm0, %v295_v44 }
  0x92   : > { %583 = vmatprep.mubr.f32.mxu0 %v291_v45  ;;  %1193 = vmatprep.mubr.msk.f32.mxu1 %vm332_vm0, %v298_v46 }
  0x95   : > { %584 = vmatmul.mubr.f32.gmra.mxu0 %v290_v47  ;;  %1194 = vmatmul.mubr.msk.f32.gmra.mxu1 %vm332_vm0, %v301_v48 }
  0x96   : > { %588 = vmatprep.mubr.f32.mxu0 %v294_v49  ;;  %1196 = vmatprep.mubr.msk.f32.mxu1 %vm332_vm0, %v304_v50 }
  0x99   : > { %589 = vmatmul.mubr.f32.gmra.mxu0 %v293_v51  ;;  %1197 = vmatmul.mubr.msk.f32.gmra.mxu1 %vm332_vm0, %v307_v52 }
  0x9a   : > { %593 = vmatprep.mubr.f32.mxu0 %v297_v53  ;;  %1199 = vmatprep.mubr.msk.f32.mxu1 %vm332_vm0, %v310_v54 }
  0x9d   : > { %594 = vmatmul.mubr.f32.gmra.mxu0 %v296_v55  ;;  %1200 = vmatmul.mubr.msk.f32.gmra.mxu1 %vm332_vm0, %v313_v56 }
  0x9e   : > { %598 = vmatprep.mubr.f32.mxu0 %v300_v57  ;;  %1202 = vmatprep.mubr.msk.f32.mxu1 %vm332_vm0, %v316_v58 }
  0xa1   : > { %599 = vmatmul.mubr.f32.gmra.mxu0 %v299_v59  ;;  %1203 = vmatmul.mubr.msk.f32.gmra.mxu1 %vm332_vm0, %v319_v60 }
  0xa2   : > { %603 = vmatprep.mubr.f32.mxu0 %v303_v61  ;;  %1205 = vmatprep.mubr.msk.f32.mxu1 %vm332_vm0, %v322_v62 }
  0xa5   : > { %604 = vmatmul.mubr.f32.gmra.mxu0 %v302_v63  ;;  %1206 = vmatmul.mubr.msk.f32.gmra.mxu1 %vm332_vm0, %v325_v0 }
  0xa6   : > { %608 = vmatprep.mubr.f32.mxu0 %v306_v1  ;;  %1208 = vmatprep.mubr.msk.f32.mxu1 %vm332_vm0, %v328_v2 }
  0xa9   : > { %609 = vmatmul.mubr.f32.gmra.mxu0 %v305_v3  ;;  %1209 = vmatmul.mubr.msk.f32.gmra.mxu1 %vm332_vm0, %v331_v4 }
 0x10d   : > { %v495_v5 = vpop.f32.mrf.mxu0  ;;  %v1639_v6 = vpop.f32.mrf.mxu1 }
 0x10f   : > { %v497_v7 = vpop.f32.mrf.mxu0  ;;  %v617_v8 = vpop.f32.mrf.mxu1 }
 0x111   : > { %v500_v9 = vpop.f32.mrf.mxu0  ;;  %v1641_v10 = vpop.f32.mrf.mxu1 }
 0x113   : > { %v502_v11 = vpop.f32.mrf.mxu0  ;;  %v622_v12 = vpop.f32.mrf.mxu1 }
 0x115   : > { %v505_v13 = vpop.f32.mrf.mxu0  ;;  %v1643_v14 = vpop.f32.mrf.mxu1 }
 0x117   : > { %v507_v15 = vpop.f32.mrf.mxu0  ;;  %v627_v16 = vpop.f32.mrf.mxu1 }
 0x119   : > { %v510_v17 = vpop.f32.mrf.mxu0  ;;  %v1645_v18 = vpop.f32.mrf.mxu1 }
 0x11b   : > { %v512_v19 = vpop.f32.mrf.mxu0  ;;  %v632_v20 = vpop.f32.mrf.mxu1 }
 0x11d   : > { %v515_v21 = vpop.f32.mrf.mxu0  ;;  %v1647_v22 = vpop.f32.mrf.mxu1 }
 0x11f   : > { %v517_v23 = vpop.f32.mrf.mxu0  ;;  %v637_v24 = vpop.f32.mrf.mxu1 }
 0x121   : > { %v520_v25 = vpop.f32.mrf.mxu0  ;;  %v1649_v26 = vpop.f32.mrf.mxu1 }
 0x123   : > { %v522_v27 = vpop.f32.mrf.mxu0  ;;  %v642_v28 = vpop.f32.mrf.mxu1 }
 0x125   : > { %v525_v29 = vpop.f32.mrf.mxu0  ;;  %v1651_v30 = vpop.f32.mrf.mxu1 }
 0x127   : > { %v527_v31 = vpop.f32.mrf.mxu0  ;;  %v647_v32 = vpop.f32.mrf.mxu1 }
 0x129   : > { %v530_v33 = vpop.f32.mrf.mxu0  ;;  %v1653_v34 = vpop.f32.mrf.mxu1 }
 0x12b   : > { %v532_v35 = vpop.f32.mrf.mxu0  ;;  %v652_v36 = vpop.f32.mrf.mxu1 }
 0x12d   : > { %v1655_v37 = vpop.f32.mrf.mxu0  ;;  %v1165_v39 = vpop.f32.mrf.mxu1 }
 0x12e   : > { %v726_v40 = vadd.f32 %v1165_v39, %v500_v9 }
 0x12f   : > { %v537_v42 = vpop.f32.mrf.mxu0  ;;  %v720_v43 = vpop.f32.mrf.mxu1 }
 0x130   : > { %v886_v44 = vmul.f32 %v1660_v38, %v726_v40  ;;  %v721_v45 = vadd.f32 %v720_v43, %v495_v5 }
 0x131   : > { %v540_v46 = vpop.f32.mrf.mxu0  ;;  %v1168_v47 = vpop.f32.mrf.mxu1 }
 0x132   : > { %v924_v48 = vadd.f32 %v1665_v41, %v886_v44  ;;  %v885_v49 = vmul.f32 %v1660_v38, %v721_v45  ;;  %v736_v50 = vadd.f32 %v1168_v47, %v510_v17 }
 0x133   : > { %v542_v51 = vpop.f32.mrf.mxu0  ;;  %v730_v52 = vpop.f32.mrf.mxu1 }
 0x134   : > { %v956_v53 = vmax.f32 %v924_v48, 0.0  ;;  %v923_v54 = vadd.f32 %v1665_v41, %v885_v49  ;;  %v888_v55 = vmul.f32 %v1660_v38, %v736_v50  ;;  %v731_v56 = vadd.f32 %v730_v52, %v505_v13 }
 0x135   : > { %v545_v57 = vpop.f32.mrf.mxu0  ;;  %v1171_v58 = vpop.f32.mrf.mxu1 }
 0x136   : > { %988 = vst.msk [vmem:[%s1674_s28 + $0x8] sm:$0xff] %vm332_vm0, %v956_v53  ;;  %v955_v59 = vmax.f32 %v923_v54, 0.0  ;;  %v926_v60 = vadd.f32 %v1665_v41, %v888_v55  ;;  %v887_v61 = vmul.f32 %v1660_v38, %v731_v56  ;;  %v746_v62 = vadd.f32 %v1171_v58, %v520_v25 }
 0x137   : > { %v547_v63 = vpop.f32.mrf.mxu0  ;;  %v740_v0 = vpop.f32.mrf.mxu1 }
 0x138   : > { %987 = vst.msk [vmem:[%s1674_s28] sm:$0xff] %vm332_vm0, %v955_v59  ;;  %v958_v1 = vmax.f32 %v926_v60, 0.0  ;;  %v925_v2 = vadd.f32 %v1665_v41, %v887_v61  ;;  %v890_v3 = vmul.f32 %v1660_v38, %v746_v62  ;;  %v741_v4 = vadd.f32 %v740_v0, %v515_v21 }
 0x139   : > { %v550_v5 = vpop.f32.mrf.mxu0  ;;  %v1174_v7 = vpop.f32.mrf.mxu1 }
 0x13a   : > { %990 = vst.msk [vmem:[%s1674_s28 + $0x18] sm:$0xff] %vm332_vm0, %v958_v1  ;;  %v957_v8 = vmax.f32 %v925_v2, 0.0  ;;  %v928_v9 = vadd.f32 %v1665_v41, %v890_v3  ;;  %v889_v11 = vmul.f32 %v1660_v38, %v741_v4  ;;  %v756_v12 = vadd.f32 %v1174_v7, %v530_v33 }
 0x13b   : > { %v552_v13 = vpop.f32.mrf.mxu0  ;;  %v750_v15 = vpop.f32.mrf.mxu1 }
 0x13c   : > { %989 = vst.msk [vmem:[%s1674_s28 + $0x10] sm:$0xff] %vm332_vm0, %v957_v8  ;;  %v960_v16 = vmax.f32 %v928_v9, 0.0  ;;  %v927_v17 = vadd.f32 %v1665_v41, %v889_v11  ;;  %v892_v19 = vmul.f32 %v1660_v38, %v756_v12  ;;  %v751_v20 = vadd.f32 %v750_v15, %v525_v29 }
 0x13d   : > { %v555_v21 = vpop.f32.mrf.mxu0  ;;  %v1177_v23 = vpop.f32.mrf.mxu1 }
 0x13e   : > { %992 = vst.msk [vmem:[%s1674_s28 + $0x28] sm:$0xff] %vm332_vm0, %v960_v16  ;;  %v959_v24 = vmax.f32 %v927_v17, 0.0  ;;  %v930_v25 = vadd.f32 %v1665_v41, %v892_v19  ;;  %v891_v27 = vmul.f32 %v1660_v38, %v751_v20  ;;  %v766_v28 = vadd.f32 %v1177_v23, %v540_v46 }
 0x13f   : > { %v557_v31 = vpop.f32.mrf.mxu0  ;;  %v760_v32 = vpop.f32.mrf.mxu1 }
 0x140   : > { %991 = vst.msk [vmem:[%s1674_s28 + $0x20] sm:$0xff] %vm332_vm0, %v959_v24  ;;  %v962_v33 = vmax.f32 %v930_v25, 0.0  ;;  %v929_v35 = vadd.f32 %v1665_v41, %v891_v27  ;;  %v894_v29 = vmul.f32 %v1660_v38, %v766_v28  ;;  %v761_v36 = vadd.f32 %v760_v32, %v1655_v37 }
 0x141   : > { %v560_v39 = vpop.f32.mrf.mxu0  ;;  %v1180_v40 = vpop.f32.mrf.mxu1 }
 0x142   : > { %994 = vst.msk [vmem:[%s1674_s28 + $0x38] sm:$0xff] %vm332_vm0, %v962_v33  ;;  %v961_v42 = vmax.f32 %v929_v35, 0.0  ;;  %v932_v43 = vadd.f32 %v1665_v41, %v894_v29  ;;  %v893_v44 = vmul.f32 %v1660_v38, %v761_v36  ;;  %v776_v45 = vadd.f32 %v1180_v40, %v550_v5 }
 0x143   : > { %v562_v46 = vpop.f32.mrf.mxu0  ;;  %v770_v47 = vpop.f32.mrf.mxu1 }
 0x144   : > { %993 = vst.msk [vmem:[%s1674_s28 + $0x30] sm:$0xff] %vm332_vm0, %v961_v42  ;;  %v964_v48 = vmax.f32 %v932_v43, 0.0  ;;  %v931_v49 = vadd.f32 %v1665_v41, %v893_v44  ;;  %v896_v37 = vmul.f32 %v1660_v38, %v776_v45  ;;  %v771_v50 = vadd.f32 %v770_v47, %v545_v57 }
 0x145   : > { %v565_v51 = vpop.f32.mrf.mxu0  ;;  %v1183_v52 = vpop.f32.mrf.mxu1 }
 0x146   : > { %996 = vst.msk [vmem:[%s1674_s28 + $0x48] sm:$0xff] %vm332_vm0, %v964_v48  ;;  %v963_v53 = vmax.f32 %v931_v49, 0.0  ;;  %v934_v54 = vadd.f32 %v1665_v41, %v896_v37  ;;  %v895_v55 = vmul.f32 %v1660_v38, %v771_v50  ;;  %v786_v56 = vadd.f32 %v1183_v52, %v560_v39 }
 0x147   : > { %v567_v58 = vpop.f32.mrf.mxu0  ;;  %v780_v59 = vpop.f32.mrf.mxu1 }
 0x148   : > { %995 = vst.msk [vmem:[%s1674_s28 + $0x40] sm:$0xff] %vm332_vm0, %v963_v53  ;;  %v966_v60 = vmax.f32 %v934_v54, 0.0  ;;  %v933_v61 = vadd.f32 %v1665_v41, %v895_v55  ;;  %v898_v57 = vmul.f32 %v1660_v38, %v786_v56  ;;  %v781_v62 = vadd.f32 %v780_v59, %v555_v21 }
 0x149   : > { %v570_v63 = vpop.f32.mrf.mxu0  ;;  %v1186_v0 = vpop.f32.mrf.mxu1 }
 0x14a   : > { %998 = vst.msk [vmem:[%s1674_s28 + $0x58] sm:$0xff] %vm332_vm0, %v966_v60  ;;  %v965_v1 = vmax.f32 %v933_v61, 0.0  ;;  %v936_v2 = vadd.f32 %v1665_v41, %v898_v57  ;;  %v897_v3 = vmul.f32 %v1660_v38, %v781_v62  ;;  %v796_v4 = vadd.f32 %v1186_v0, %v570_v63 }
 0x14b   : > { %v572_v5 = vpop.f32.mrf.mxu0  ;;  %v790_v7 = vpop.f32.mrf.mxu1 }
 0x14c   : > { %997 = vst.msk [vmem:[%s1674_s28 + $0x50] sm:$0xff] %vm332_vm0, %v965_v1  ;;  %v968_v8 = vmax.f32 %v936_v2, 0.0  ;;  %v935_v9 = vadd.f32 %v1665_v41, %v897_v3  ;;  %v900_v11 = vmul.f32 %v1660_v38, %v796_v4  ;;  %v791_v12 = vadd.f32 %v790_v7, %v565_v51 }
 0x14d   : > { %v575_v13 = vpop.f32.mrf.mxu0  ;;  %v1189_v15 = vpop.f32.mrf.mxu1 }
 0x14e   : > { %1000 = vst.msk [vmem:[%s1674_s28 + $0x68] sm:$0xff] %vm332_vm0, %v968_v8  ;;  %v967_v16 = vmax.f32 %v935_v9, 0.0  ;;  %v938_v17 = vadd.f32 %v1665_v41, %v900_v11  ;;  %v899_v19 = vmul.f32 %v1660_v38, %v791_v12 }
 0x14f   : > { %v577_v20 = vpop.f32.mrf.mxu0  ;;  %v800_v21 = vpop.f32.mrf.mxu1 }
 0x150   : > { %999 = vst.msk [vmem:[%s1674_s28 + $0x60] sm:$0xff] %vm332_vm0, %v967_v16  ;;  %v970_v23 = vmax.f32 %v938_v17, 0.0  ;;  %v937_v24 = vadd.f32 %v1665_v41, %v899_v19  ;;  %v801_v25 = vadd.f32 %v800_v21, %v575_v13 }
 0x151   : > { %v580_v27 = vpop.f32.mrf.mxu0  ;;  %v1192_v28 = vpop.f32.mrf.mxu1 }
 0x152   : > { %1002 = vst.msk [vmem:[%s1674_s28 + $0x78] sm:$0xff] %vm332_vm0, %v970_v23  ;;  %v969_v31 = vmax.f32 %v937_v24, 0.0  ;;  %v901_v32 = vmul.f32 %v1660_v38, %v801_v25  ;;  %v806_v33 = vadd.f32 %v1189_v15, %v580_v27 }
 0x153   : > { %v582_v35 = vpop.f32.mrf.mxu0  ;;  %v810_v29 = vpop.f32.mrf.mxu1 }
 0x154   : > { %1001 = vst.msk [vmem:[%s1674_s28 + $0x70] sm:$0xff] %vm332_vm0, %v969_v31  ;;  %v939_v36 = vadd.f32 %v1665_v41, %v901_v32  ;;  %v902_v39 = vmul.f32 %v1660_v38, %v806_v33 }
 0x155   : > { %v585_v40 = vpop.f32.mrf.mxu0  ;;  %v1195_v42 = vpop.f32.mrf.mxu1 }
 0x156   : > { %v971_v43 = vmax.f32 %v939_v36, 0.0  ;;  %v940_v44 = vadd.f32 %v1665_v41, %v902_v39  ;;  %v811_v45 = vadd.f32 %v810_v29, %v585_v40 }
 0x157   : > { %v587_v46 = vpop.f32.mrf.mxu0  ;;  %v820_v47 = vpop.f32.mrf.mxu1 }
 0x158   : > { %1003 = vst.msk [vmem:[%s1674_s28 + $0x80] sm:$0xff] %vm332_vm0, %v971_v43  ;;  %v972_v48 = vmax.f32 %v940_v44, 0.0  ;;  %v903_v49 = vmul.f32 %v1660_v38, %v811_v45 }
 0x159   : > { %v590_v37 = vpop.f32.mrf.mxu0  ;;  %v1198_v50 = vpop.f32.mrf.mxu1 }
 0x15a   : > { %1004 = vst.msk [vmem:[%s1674_s28 + $0x88] sm:$0xff] %vm332_vm0, %v972_v48  ;;  %v941_v51 = vadd.f32 %v1665_v41, %v903_v49  ;;  %v816_v52 = vadd.f32 %v1192_v28, %v590_v37 }
 0x15b   : > { %v592_v53 = vpop.f32.mrf.mxu0  ;;  %v830_v54 = vpop.f32.mrf.mxu1 }
 0x15c   : > { %v973_v55 = vmax.f32 %v941_v51, 0.0  ;;  %v904_v56 = vmul.f32 %v1660_v38, %v816_v52 }
 0x15d   : > { %v595_v58 = vpop.f32.mrf.mxu0  ;;  %v1201_v59 = vpop.f32.mrf.mxu1 }
 0x15e   : > { %1005 = vst.msk [vmem:[%s1674_s28 + $0x90] sm:$0xff] %vm332_vm0, %v973_v55  ;;  %v942_v60 = vadd.f32 %v1665_v41, %v904_v56  ;;  %v821_v61 = vadd.f32 %v820_v47, %v595_v58  ;;  %v846_v57 = vadd.f32 %v1201_v59, %v1641_v10 }
 0x15f   : > { %v597_v62 = vpop.f32.mrf.mxu0  ;;  %v840_v63 = vpop.f32.mrf.mxu1 }
 0x160   : > { %v974_v0 = vmax.f32 %v942_v60, 0.0  ;;  %v905_v1 = vmul.f32 %v1660_v38, %v821_v61  ;;  %v910_v2 = vmul.f32 %v1660_v38, %v846_v57  ;;  %v841_v3 = vadd.f32 %v840_v63, %v1639_v6 }
 0x161   : > { %v600_v4 = vpop.f32.mrf.mxu0  ;;  %v1204_v5 = vpop.f32.mrf.mxu1 }
 0x162   : > { %1006 = vst.msk [vmem:[%s1674_s28 + $0x98] sm:$0xff] %vm332_vm0, %v974_v0  ;;  %v943_v7 = vadd.f32 %v1665_v41, %v905_v1  ;;  %v948_v8 = vadd.f32 %v1665_v41, %v910_v2  ;;  %v909_v10 = vmul.f32 %v1660_v38, %v841_v3  ;;  %v826_v9 = vadd.f32 %v1195_v42, %v600_v4 }
 0x163   : > { %v856_v11 = vadd.f32 %v1204_v5, %v1645_v18  ;;  %v602_v12 = vpop.f32.mrf.mxu0  ;;  %v850_v13 = vpop.f32.mrf.mxu1 }
 0x164   : > { %v975_v15 = vmax.f32 %v943_v7, 0.0  ;;  %v980_v16 = vmax.f32 %v948_v8, 0.0  ;;  %v947_v6 = vadd.f32 %v1665_v41, %v909_v10  ;;  %v906_v17 = vmul.f32 %v1660_v38, %v826_v9 }
 0x165   : > { %v912_v19 = vmul.f32 %v1660_v38, %v856_v11  ;;  %v851_v20 = vadd.f32 %v850_v13, %v1643_v14  ;;  %v605_v21 = vpop.f32.mrf.mxu0  ;;  %v1207_v23 = vpop.f32.mrf.mxu1 }
 0x166   : > { %1007 = vst.msk [vmem:[%s1674_s28 + $0xa0] sm:$0xff] %vm332_vm0, %v975_v15  ;;  %1012 = vst.msk [vmem:[%s1674_s28 + $0xc8] sm:$0xff] %vm332_vm0, %v980_v16  ;;  %v979_v18 = vmax.f32 %v947_v6, 0.0  ;;  %v944_v24 = vadd.f32 %v1665_v41, %v906_v17  ;;  %v831_v25 = vadd.f32 %v830_v54, %v605_v21  ;;  %v866_v27 = vadd.f32 %v1207_v23, %v1649_v26 }
 0x167   : > { %v950_v28 = vadd.f32 %v1665_v41, %v912_v19  ;;  %v911_v31 = vmul.f32 %v1660_v38, %v851_v20  ;;  %v607_v32 = vpop.f32.mrf.mxu0  ;;  %v860_v14 = vpop.f32.mrf.mxu1 }
 0x168   : > { %1011 = vst.msk [vmem:[%s1674_s28 + $0xc0] sm:$0xff] %vm332_vm0, %v979_v18  ;;  %v976_v33 = vmax.f32 %v944_v24, 0.0  ;;  %v907_v35 = vmul.f32 %v1660_v38, %v831_v25  ;;  %v914_v29 = vmul.f32 %v1660_v38, %v866_v27  ;;  %v861_v36 = vadd.f32 %v860_v14, %v1647_v22 }
 0x169   : > { %v982_v39 = vmax.f32 %v950_v28, 0.0  ;;  %v949_v40 = vadd.f32 %v1665_v41, %v911_v31  ;;  %v610_v26 = vpop.f32.mrf.mxu0  ;;  %v1210_v42 = vpop.f32.mrf.mxu1 }
 0x16a   : > { %1008 = vst.msk [vmem:[%s1674_s28 + $0xa8] sm:$0xff] %vm332_vm0, %v976_v33  ;;  %v945_v43 = vadd.f32 %v1665_v41, %v907_v35  ;;  %v952_v44 = vadd.f32 %v1665_v41, %v914_v29  ;;  %v913_v45 = vmul.f32 %v1660_v38, %v861_v36  ;;  %v836_v46 = vadd.f32 %v1198_v50, %v610_v26 }
 0x16b   : > { %1014 = vst.msk [vmem:[%s1674_s28 + $0xd8] sm:$0xff] %vm332_vm0, %v982_v39  ;;  %v981_v22 = vmax.f32 %v949_v40, 0.0  ;;  %v876_v47 = vadd.f32 %v1210_v42, %v1653_v34  ;;  %v870_v48 = vpop.f32.mrf.mxu1  ;;  %v612_v49 = vpop.f32.mrf.mxu0 }
 0x16c   : > { %v977_v37 = vmax.f32 %v945_v43, 0.0  ;;  %v984_v51 = vmax.f32 %v952_v44, 0.0  ;;  %v951_v52 = vadd.f32 %v1665_v41, %v913_v45  ;;  %v908_v53 = vmul.f32 %v1660_v38, %v836_v46 }
 0x16d   : > { %1013 = vst.msk [vmem:[%s1674_s28 + $0xd0] sm:$0xff] %vm332_vm0, %v981_v22  ;;  %v916_v50 = vmul.f32 %v1660_v38, %v876_v47  ;;  %v871_v54 = vadd.f32 %v870_v48, %v1651_v30 }
 0x16e   : > { %1009 = vst.msk [vmem:[%s1674_s28 + $0xb0] sm:$0xff] %vm332_vm0, %v977_v37  ;;  %1016 = vst.msk [vmem:[%s1674_s28 + $0xe8] sm:$0xff] %vm332_vm0, %v984_v51  ;;  %v983_v34 = vmax.f32 %v951_v52, 0.0  ;;  %v946_v55 = vadd.f32 %v1665_v41, %v908_v53 }
 0x16f   : > { %v954_v56 = vadd.f32 %v1665_v41, %v916_v50  ;;  %v915_v58 = vmul.f32 %v1660_v38, %v871_v54 }
 0x170   : > { %1015 = vst.msk [vmem:[%s1674_s28 + $0xe0] sm:$0xff] %vm332_vm0, %v983_v34  ;;  %v978_v59 = vmax.f32 %v946_v55, 0.0 }
 0x171   : > { %v986_v60 = vmax.f32 %v954_v56, 0.0  ;;  %v953_v61 = vadd.f32 %v1665_v41, %v915_v58 }
 0x172   : > { %1010 = vst.msk [vmem:[%s1674_s28 + $0xb8] sm:$0xff] %vm332_vm0, %v978_v59 }
 0x173   : > { %1018 = vst.msk [vmem:[%s1674_s28 + $0xf8] sm:$0xff] %vm332_vm0, %v986_v60  ;;  %v985_v30 = vmax.f32 %v953_v61, 0.0 }
 0x175   : > { %1017 = vst.msk [vmem:[%s1674_s28 + $0xf0] sm:$0xff] %vm332_vm0, %v985_v30 }
 0x176 PF: > { %s14_s15 = sadd.s32 1, %s1291_s15  }
 0x177   : > { %p11_p4 = scmp.ge.s32.totalorder %s14_s15, 4  }
 0x179   :  { %13 = sbr.rel (!%p11_p4) target bundleno = 1 (0x1), region = 66 }

// kernel: basic_block_forward.3
= control target key start
LH: loop header
LB: loop body
LE: loop exit
PB: predicated region body
PF: predicated region fallthrough
CT: control target
= control target key end

     0   :  { %12 = vsyncpa [#allocation3], 0  ;;  %s2616_s0 = inlined_call_operand.vmem [shape: f32[2,256,288], index: 0, kind: input, shape index: {}]   ;;  %s2617_s1 = inlined_call_operand.vmem [shape: f32[2,256,32], index: 1, kind: input, shape index: {}]   ;;  %s2618_s2 = inlined_call_operand.vmem [shape: f32[288,32], index: 2, kind: input, shape index: {}]   ;;  %s2619_s3 = inlined_call_operand.vmem [shape: f32[1,32], index: 3, kind: input, shape index: {}]   ;;  %s2620_s4 = inlined_call_operand.vmem [shape: f32[1,32], index: 4, kind: input, shape index: {}]   ;;  %s2621_s5 = inlined_call_operand.vmem [shape: f32[2,32], index: 5, kind: input, shape index: {}]   ;;  %s2622_s6 = inlined_call_operand.vmem [shape: f32[2,32], index: 6, kind: input, shape index: {}]   ;;  %s2623_s7 = inlined_call_operand.hbm [shape: f32[2,256,32], index: 7, kind: output, shape index: {}]  }
   0x1   :  { %14 = vsyncpa [#allocation3 + $0x1], 0  ;;  %s1761_s24 = smov 0   ;;  %s1763_s25 = smov 0  }
   0x2   :  { %s1765_s26 = smov 0   ;;  %s1767_s27 = smov 0  }
   0x3 LB: > { %s1782_s28 = sadd.s32 4294967295, %s1715_s27   ;;  %s1402_s29 = sadd.s32 4294967294, %s1715_s27   ;;  %s1715_s27 = sphi %s1767_s27, %s2629_s27   ;;  %s1711_s26 = sphi %s1765_s26, %s2628_s26   ;;  %s1707_s25 = sphi %s1763_s25, %s2627_s25   ;;  %s1703_s24 = sphi %s1761_s24, %s2626_s24  }
   0x4   : > { %s1786_s30 = sadd.s32 1, %s1715_s27   ;;  %s184_s8 = sadd.s32 1, %s1711_s26 }
   0x5   : > { %s181_s9 = ssub.s32 %s1715_s27, %s1786_s30  ;;  %p194_p0 = scmp.ne.s32.totalorder %s1711_s26, %s1707_s25 }
   0x6   : > { %p182_p1 = scmp.eq.s32.totalorder %s181_s9, 0  ;;  %p195_p2 = scmp.eq.s32.totalorder %s1782_s28, 1 }
   0x7   : > { %p200_p3 = scmp.ne.s32.totalorder %s1707_s25, %s1703_s24  ;;  %p201_p4 = scmp.eq.s32.totalorder %s1402_s29, 1 }
   0x8   : > { %s1797_s10 = scalar_select %p182_p1, %s1711_s26, %s184_s8  }
   0x9   : > { %p1799_p5 = por %p195_p2, %p194_p0  ;;  %p1803_p6 = por %p201_p4, %p200_p3 }
   0xa   : > { %p1405_p7 = scmp.ge.s32.totalorder %s1715_s27, 1  ;;  %p250_p8 = scmp.lt.s32.totalorder %s1715_s27, 3 }
   0xc   : > { %p251_p9 = pnand %p1405_p7, %p250_p8 }
   0xd   : > { %p287_p10 = scmp.lt.s32.totalorder (!%p251_p9), %s1782_s28, 1  ;;  %s1451_s22 = sshll.u32 (!%p251_p9), %s1782_s28, 12 }
   0xe   : > { %254 = sbr.rel (%p251_p9) target bundleno = 641 (0x281), region = 48  ;;  %s2542_s9 = scalar_lea.hbm (!%p251_p9), %s2623_s7, %s1451_s22 }
   0xf   : > { %s1718_s15 = smov (!%p251_p9), [#allocation2]  }
  0x13   : > { %v312_v0 = vld [vmem:[%s2618_s2 + $0x78] sm:$0xff]  ;;  %v1717_v1 = vmov 0.0   ;;  %v311_v2 = vld [vmem:[%s2618_s2 + $0x70] sm:$0xff]  ;;  %v310_v3 = vld [vmem:[%s2618_s2 + $0x68] sm:$0xff]  ;;  %s1944_s8 = scalar_select %p287_p10, %s1782_s28, 1  ;;  %vm433_vm0 = vcmask 261120  }
  0x14   : > { %530 = vmatprep.subr.mxu0 %v1717_v1  ;;  %1544 = vmatprep.subr.mxu1 %v1717_v1  ;;  %v309_v4 = vld [vmem:[%s2618_s2 + $0x60] sm:$0xff]  ;;  %v308_v5 = vld [vmem:[%s2618_s2 + $0x58] sm:$0xff]  ;;  %v307_v6 = vld [vmem:[%s2618_s2 + $0x50] sm:$0xff]  ;;  %vm1134_vm1 = vcmask 254977   ;;  %vm1127_vm2 = vcmask 253952  }
  0x15   : > { %531 = vmatpush1.msra.mxu0 %v312_v0  ;;  %1576 = vmatpush1.msra.mxu1 %v312_v0  ;;  %v306_v7 = vld [vmem:[%s2618_s2 + $0x48] sm:$0xff]  ;;  %v305_v8 = vld [vmem:[%s2618_s2 + $0x40] sm:$0xff]  ;;  %v304_v9 = vld [vmem:[%s2618_s2 + $0x38] sm:$0xff]  ;;  %s1608_s16 = smul.u32 768, %s1944_s8 }
  0x16   : > { %532 = vmatprep.subr.mxu0 %v1717_v1  ;;  %1545 = vmatprep.subr.mxu1 %v1717_v1  ;;  %v303_v10 = vld [vmem:[%s2618_s2 + $0x30] sm:$0xff]  ;;  %v302_v11 = vld [vmem:[%s2618_s2 + $0x28] sm:$0xff]  ;;  %v301_v12 = vld [vmem:[%s2618_s2 + $0x20] sm:$0xff] }
  0x17   : > { %533 = vmatpush1.msra.mxu0 %v311_v2  ;;  %1577 = vmatpush1.msra.mxu1 %v311_v2  ;;  %v300_v13 = vld [vmem:[%s2618_s2 + $0x18] sm:$0xff]  ;;  %v299_v14 = vld [vmem:[%s2618_s2 + $0x10] sm:$0xff]  ;;  %v298_v15 = vld [vmem:[%s2618_s2 + $0x8] sm:$0xff]  ;;  %s1970_s23 = scalar_lea.vmem %s2616_s0, %s1608_s16  ;;  %s1450_s16 = sshll.u32 %s1944_s8, 8 }
  0x18   : > { %534 = vmatprep.subr.mxu0 %v1717_v1  ;;  %1546 = vmatprep.subr.mxu1 %v1717_v1  ;;  %v297_v16 = vld [vmem:[%s2618_s2] sm:$0xff]  ;;  %v328_v17 = vld [vmem:[%s2618_s2 + $0xf8] sm:$0xff]  ;;  %v327_v18 = vld [vmem:[%s2618_s2 + $0xf0] sm:$0xff]  ;;  %s2355_s19 = scalar_lea.vmem %s2617_s1, %s1450_s16  ;;  %s284_s8 = sand.u32 1, %s1707_s25  }
  0x19   : > { %535 = vmatpush1.msra.mxu0 %v310_v3  ;;  %1578 = vmatpush1.msra.mxu1 %v310_v3  ;;  %v326_v19 = vld [vmem:[%s2618_s2 + $0xe8] sm:$0xff]  ;;  %v325_v20 = vld [vmem:[%s2618_s2 + $0xe0] sm:$0xff]  ;;  %v324_v21 = vld [vmem:[%s2618_s2 + $0xd8] sm:$0xff]  ;;  %s2437_s20 = sshll.u32 %s284_s8, 8  ;;  %s2576_s13 = scalar_lea.sflag [#allocation3], %s284_s8 }
  0x1a   : > { %536 = vmatprep.subr.mxu0 %v1717_v1  ;;  %1547 = vmatprep.subr.mxu1 %v1717_v1  ;;  %v323_v22 = vld [vmem:[%s2618_s2 + $0xd0] sm:$0xff]  ;;  %v322_v23 = vld [vmem:[%s2618_s2 + $0xc8] sm:$0xff]  ;;  %v321_v24 = vld [vmem:[%s2618_s2 + $0xc0] sm:$0xff]  ;;  %s2479_s21 = scalar_lea.vmem [#allocation2], %s2437_s20  ;;  %s1659_s16 = sshll.u32 %s1718_s15, 4  ;;  %s1660_s16 = int_to_ptr.vmem [resolvable:$false] %s1659_s16 }
  0x1b   : > { %537 = vmatpush1.msra.mxu0 %v309_v4  ;;  %1579 = vmatpush1.msra.mxu1 %v309_v4  ;;  %v320_v25 = vld [vmem:[%s2618_s2 + $0xb8] sm:$0xff]  ;;  %v319_v26 = vld [vmem:[%s2618_s2 + $0xb0] sm:$0xff]  ;;  %v318_v27 = vld [vmem:[%s2618_s2 + $0xa8] sm:$0xff]  ;;  %s1661_s17 = scalar_lea.vmem %s1660_s16, 8192 }
  0x1c   : > { %538 = vmatprep.subr.mxu0 %v1717_v1  ;;  %1548 = vmatprep.subr.mxu1 %v1717_v1  ;;  %v317_v28 = vld [vmem:[%s2618_s2 + $0xa0] sm:$0xff]  ;;  %v316_v29 = vld [vmem:[%s2618_s2 + $0x98] sm:$0xff]  ;;  %v315_v30 = vld [vmem:[%s2618_s2 + $0x90] sm:$0xff] }
  0x1d   : > { %539 = vmatpush1.msra.mxu0 %v308_v5  ;;  %1580 = vmatpush1.msra.mxu1 %v308_v5  ;;  %v314_v31 = vld [vmem:[%s2618_s2 + $0x88] sm:$0xff]  ;;  %v313_v32 = vld [vmem:[%s2618_s2 + $0x80] sm:$0xff]  ;;  %v332_v39 = vld [vmem:[%s2618_s2 + $0x118] sm:$0xff] }
  0x1e   : > { %540 = vmatprep.subr.mxu0 %v1717_v1  ;;  %1549 = vmatprep.subr.mxu1 %v1717_v1  ;;  %v338_v33 = vld [vmem:[%s1970_s23 + $0x8] sm:$0xff]  ;;  %v337_v35 = vld [vmem:[%s1970_s23] sm:$0xff]  ;;  %v340_v40 = vld [vmem:[%s1970_s23 + $0x18] sm:$0xff] }
  0x1f   : > { %541 = vmatpush1.msra.mxu0 %v307_v6  ;;  %1581 = vmatpush1.msra.mxu1 %v307_v6  ;;  %v410_v34 = vld [vmem:[%s1970_s23 + $0x248] sm:$0xff]  ;;  %v409_v36 = vld [vmem:[%s1970_s23 + $0x240] sm:$0xff]  ;;  %v412_v41 = vld [vmem:[%s1970_s23 + $0x258] sm:$0xff] }
  0x20   : > { %542 = vmatprep.subr.mxu0 %v1717_v1  ;;  %1550 = vmatprep.subr.mxu1 %v1717_v1  ;;  %v341_v37 = vld [vmem:[%s1970_s23 + $0x20] sm:$0xff]  ;;  %v344_v42 = vld [vmem:[%s1970_s23 + $0x38] sm:$0xff]  ;;  %v331_v44 = vld [vmem:[%s2618_s2 + $0x110] sm:$0xff] }
  0x21   : > { %543 = vmatpush1.msra.mxu0 %v306_v7  ;;  %1582 = vmatpush1.msra.mxu1 %v306_v7  ;;  %v413_v38 = vld [vmem:[%s1970_s23 + $0x260] sm:$0xff]  ;;  %v416_v43 = vld [vmem:[%s1970_s23 + $0x278] sm:$0xff]  ;;  %v343_v45 = vld [vmem:[%s1970_s23 + $0x30] sm:$0xff] }
  0x22   : > { %544 = vmatprep.subr.mxu0 %v1717_v1  ;;  %1551 = vmatprep.subr.mxu1 %v1717_v1  ;;  %v415_v46 = vld [vmem:[%s1970_s23 + $0x270] sm:$0xff]  ;;  %v330_v49 = vld [vmem:[%s2618_s2 + $0x108] sm:$0xff]  ;;  %v329_v54 = vld [vmem:[%s2618_s2 + $0x100] sm:$0xff] }
  0x23   : > { %545 = vmatpush1.msra.mxu0 %v305_v8  ;;  %1583 = vmatpush1.msra.mxu1 %v305_v8  ;;  %v347_v47 = vld [vmem:[%s1970_s23 + $0x50] sm:$0xff]  ;;  %v346_v50 = vld [vmem:[%s1970_s23 + $0x48] sm:$0xff]  ;;  %v349_v55 = vld [vmem:[%s1970_s23 + $0x60] sm:$0xff] }
  0x24   : > { %546 = vmatprep.subr.mxu0 %v1717_v1  ;;  %1552 = vmatprep.subr.mxu1 %v1717_v1  ;;  %v419_v48 = vld [vmem:[%s1970_s23 + $0x290] sm:$0xff]  ;;  %v418_v51 = vld [vmem:[%s1970_s23 + $0x288] sm:$0xff]  ;;  %v421_v56 = vld [vmem:[%s1970_s23 + $0x2a0] sm:$0xff] }
  0x25   : > { %547 = vmatpush1.msra.mxu0 %v304_v9  ;;  %1584 = vmatpush1.msra.mxu1 %v304_v9  ;;  %v350_v52 = vld [vmem:[%s1970_s23 + $0x68] sm:$0xff]  ;;  %v353_v57 = vld [vmem:[%s1970_s23 + $0x80] sm:$0xff]  ;;  %v352_v59 = vld [vmem:[%s1970_s23 + $0x78] sm:$0xff] }
  0x26   : > { %548 = vmatprep.subr.mxu0 %v1717_v1  ;;  %1553 = vmatprep.subr.mxu1 %v1717_v1  ;;  %v422_v53 = vld [vmem:[%s1970_s23 + $0x2a8] sm:$0xff]  ;;  %v425_v58 = vld [vmem:[%s1970_s23 + $0x2c0] sm:$0xff]  ;;  %v424_v60 = vld [vmem:[%s1970_s23 + $0x2b8] sm:$0xff] }
  0x27   : > { %549 = vmatpush1.msra.mxu0 %v303_v10  ;;  %1585 = vmatpush1.msra.mxu1 %v303_v10  ;;  %v356_v61 = vld [vmem:[%s1970_s23 + $0x98] sm:$0xff]  ;;  %v355_v63 = vld [vmem:[%s1970_s23 + $0x90] sm:$0xff]  ;;  %v358_v3 = vld [vmem:[%s1970_s23 + $0xa8] sm:$0xff] }
  0x28   : > { %550 = vmatprep.subr.mxu0 %v1717_v1  ;;  %1554 = vmatprep.subr.mxu1 %v1717_v1  ;;  %v428_v62 = vld [vmem:[%s1970_s23 + $0x2d8] sm:$0xff]  ;;  %v427_v0 = vld [vmem:[%s1970_s23 + $0x2d0] sm:$0xff]  ;;  %v430_v4 = vld [vmem:[%s1970_s23 + $0x2e8] sm:$0xff] }
  0x29   : > { %551 = vmatpush1.msra.mxu0 %v302_v11  ;;  %1586 = vmatpush1.msra.mxu1 %v302_v11  ;;  %v431_v2 = vld [vmem:[%s1970_s23 + $0x2f0] sm:$0xff]  ;;  %v362_v5 = vld [vmem:[%s1970_s23 + $0xc8] sm:$0xff]  ;;  %v361_v7 = vld [vmem:[%s1970_s23 + $0xc0] sm:$0xff] }
  0x2a   : > { %552 = vmatprep.subr.mxu0 %v1717_v1  ;;  %1555 = vmatprep.subr.mxu1 %v1717_v1  ;;  %v339_v6 = vld [vmem:[%s1970_s23 + $0x10] sm:$0xff]  ;;  %v342_v8 = vld [vmem:[%s1970_s23 + $0x28] sm:$0xff]  ;;  %v365_v9 = vld [vmem:[%s1970_s23 + $0xe0] sm:$0xff] }
  0x2b   : > { %553 = vmatpush1.msra.mxu0 %v301_v12  ;;  %1587 = vmatpush1.msra.mxu1 %v301_v12  ;;  %v345_v10 = vld [vmem:[%s1970_s23 + $0x40] sm:$0xff]  ;;  %v364_v11 = vld [vmem:[%s1970_s23 + $0xd8] sm:$0xff] }
  0x2c   : > { %554 = vmatprep.subr.mxu0 %v1717_v1  ;;  %1556 = vmatprep.subr.mxu1 %v1717_v1  ;;  %v348_v12 = vld [vmem:[%s1970_s23 + $0x58] sm:$0xff] }
  0x2d   : > { %555 = vmatpush1.msra.mxu0 %v300_v13  ;;  %1588 = vmatpush1.msra.mxu1 %v300_v13  ;;  %v368_v13 = vld [vmem:[%s1970_s23 + $0xf8] sm:$0xff] }
  0x2e   : > { %556 = vmatprep.subr.mxu0 %v1717_v1  ;;  %1557 = vmatprep.subr.mxu1 %v1717_v1 }
  0x2f   : > { %557 = vmatpush1.msra.mxu0 %v299_v14  ;;  %1589 = vmatpush1.msra.mxu1 %v299_v14  ;;  %v351_v14 = vld [vmem:[%s1970_s23 + $0x70] sm:$0xff] }
  0x30   : > { %558 = vmatprep.subr.mxu0 %v1717_v1  ;;  %1558 = vmatprep.subr.mxu1 %v1717_v1 }
  0x31   : > { %559 = vmatpush1.msra.mxu0 %v298_v15  ;;  %1590 = vmatpush1.msra.mxu1 %v298_v15  ;;  %v367_v15 = vld [vmem:[%s1970_s23 + $0xf0] sm:$0xff] }
  0x32   : > { %560 = vmatprep.subr.mxu0 %v1717_v1  ;;  %1559 = vmatprep.subr.mxu1 %v1717_v1 }
  0x33   : > { %561 = vmatpush1.msra.mxu0 %v297_v16  ;;  %1591 = vmatpush1.msra.mxu1 %v297_v16  ;;  %v354_v16 = vld [vmem:[%s1970_s23 + $0x88] sm:$0xff] }
  0x34   : > { %562 = vmatprep.subr.mxu0 %v1717_v1  ;;  %1560 = vmatprep.subr.mxu1 %v1717_v1 }
  0x35   : > { %563 = vmatpush2.msra.mxu0 %v328_v17  ;;  %1592 = vmatpush2.msra.mxu1 %v328_v17  ;;  %v371_v17 = vld [vmem:[%s1970_s23 + $0x110] sm:$0xff] }
  0x36   : > { %564 = vmatprep.subr.mxu0 %v1717_v1  ;;  %1561 = vmatprep.subr.mxu1 %v1717_v1 }
  0x37   : > { %565 = vmatpush2.msra.mxu0 %v327_v18  ;;  %1593 = vmatpush2.msra.mxu1 %v327_v18  ;;  %v357_v18 = vld [vmem:[%s1970_s23 + $0xa0] sm:$0xff] }
  0x38   : > { %566 = vmatprep.subr.mxu0 %v1717_v1  ;;  %1562 = vmatprep.subr.mxu1 %v1717_v1 }
  0x39   : > { %567 = vmatpush2.msra.mxu0 %v326_v19  ;;  %1594 = vmatpush2.msra.mxu1 %v326_v19  ;;  %v370_v19 = vld [vmem:[%s1970_s23 + $0x108] sm:$0xff] }
  0x3a   : > { %568 = vmatprep.subr.mxu0 %v1717_v1  ;;  %1563 = vmatprep.subr.mxu1 %v1717_v1 }
  0x3b   : > { %569 = vmatpush2.msra.mxu0 %v325_v20  ;;  %1595 = vmatpush2.msra.mxu1 %v325_v20  ;;  %v360_v20 = vld [vmem:[%s1970_s23 + $0xb8] sm:$0xff] }
  0x3c   : > { %570 = vmatprep.subr.mxu0 %v1717_v1  ;;  %1564 = vmatprep.subr.mxu1 %v1717_v1 }
  0x3d   : > { %571 = vmatpush2.msra.mxu0 %v324_v21  ;;  %1596 = vmatpush2.msra.mxu1 %v324_v21  ;;  %v374_v21 = vld [vmem:[%s1970_s23 + $0x128] sm:$0xff] }
  0x3e   : > { %572 = vmatprep.subr.mxu0 %v1717_v1  ;;  %1565 = vmatprep.subr.mxu1 %v1717_v1 }
  0x3f   : > { %573 = vmatpush2.msra.mxu0 %v323_v22  ;;  %1597 = vmatpush2.msra.mxu1 %v323_v22  ;;  %v363_v22 = vld [vmem:[%s1970_s23 + $0xd0] sm:$0xff] }
  0x40   : > { %574 = vmatprep.subr.mxu0 %v1717_v1  ;;  %1566 = vmatprep.subr.mxu1 %v1717_v1 }
  0x41   : > { %575 = vmatpush2.msra.mxu0 %v322_v23  ;;  %1598 = vmatpush2.msra.mxu1 %v322_v23  ;;  %v373_v23 = vld [vmem:[%s1970_s23 + $0x120] sm:$0xff] }
  0x42   : > { %576 = vmatprep.subr.mxu0 %v1717_v1  ;;  %1567 = vmatprep.subr.mxu1 %v1717_v1 }
  0x43   : > { %577 = vmatpush2.msra.mxu0 %v321_v24  ;;  %1599 = vmatpush2.msra.mxu1 %v321_v24  ;;  %v366_v24 = vld [vmem:[%s1970_s23 + $0xe8] sm:$0xff] }
  0x44   : > { %578 = vmatprep.subr.mxu0 %v1717_v1  ;;  %1568 = vmatprep.subr.mxu1 %v1717_v1 }
  0x45   : > { %579 = vmatpush2.msra.mxu0 %v320_v25  ;;  %1600 = vmatpush2.msra.mxu1 %v320_v25  ;;  %v377_v25 = vld [vmem:[%s1970_s23 + $0x140] sm:$0xff] }
  0x46   : > { %580 = vmatprep.subr.mxu0 %v1717_v1  ;;  %1569 = vmatprep.subr.mxu1 %v1717_v1 }
  0x47   : > { %581 = vmatpush2.msra.mxu0 %v319_v26  ;;  %1601 = vmatpush2.msra.mxu1 %v319_v26  ;;  %v369_v26 = vld [vmem:[%s1970_s23 + $0x100] sm:$0xff] }
  0x48   : > { %582 = vmatprep.subr.mxu0 %v1717_v1  ;;  %1570 = vmatprep.subr.mxu1 %v1717_v1 }
  0x49   : > { %583 = vmatpush2.msra.mxu0 %v318_v27  ;;  %1602 = vmatpush2.msra.mxu1 %v318_v27  ;;  %v376_v27 = vld [vmem:[%s1970_s23 + $0x138] sm:$0xff] }
  0x4a   : > { %584 = vmatprep.subr.mxu0 %v1717_v1  ;;  %1571 = vmatprep.subr.mxu1 %v1717_v1 }
  0x4b   : > { %585 = vmatpush2.msra.mxu0 %v317_v28  ;;  %1603 = vmatpush2.msra.mxu1 %v317_v28  ;;  %v372_v28 = vld [vmem:[%s1970_s23 + $0x118] sm:$0xff] }
  0x4c   : > { %586 = vmatprep.subr.mxu0 %v1717_v1  ;;  %1572 = vmatprep.subr.mxu1 %v1717_v1 }
  0x4d   : > { %587 = vmatpush2.msra.mxu0 %v316_v29  ;;  %1604 = vmatpush2.msra.mxu1 %v316_v29  ;;  %v380_v29 = vld [vmem:[%s1970_s23 + $0x158] sm:$0xff] }
  0x4e   : > { %588 = vmatprep.subr.mxu0 %v1717_v1  ;;  %1573 = vmatprep.subr.mxu1 %v1717_v1 }
  0x4f   : > { %589 = vmatpush2.msra.mxu0 %v315_v30  ;;  %1605 = vmatpush2.msra.mxu1 %v315_v30  ;;  %v375_v30 = vld [vmem:[%s1970_s23 + $0x130] sm:$0xff] }
  0x50   : > { %590 = vmatprep.subr.mxu0 %v1717_v1  ;;  %1574 = vmatprep.subr.mxu1 %v1717_v1 }
  0x51   : > { %591 = vmatpush2.msra.mxu0 %v314_v31  ;;  %1606 = vmatpush2.msra.mxu1 %v314_v31  ;;  %v379_v31 = vld [vmem:[%s1970_s23 + $0x150] sm:$0xff] }
  0x52   : > { %592 = vmatprep.subr.mxu0 %v1717_v1  ;;  %1575 = vmatprep.subr.mxu1 %v1717_v1  ;;  %v359_v1 = vld [vmem:[%s1970_s23 + $0xb0] sm:$0xff] }
  0x53   : > { %593 = vmatpush2.msra.mxu0 %v313_v32  ;;  %1607 = vmatpush2.msra.mxu1 %v313_v32  ;;  %v378_v32 = vld [vmem:[%s1970_s23 + $0x148] sm:$0xff] }
  0x54   : > { %594 = vmatprep.mubr.f32.mxu0 %v338_v33  ;;  %714 = vmatprep.mubr.f32.mxu1 %v410_v34  ;;  %v383_v33 = vld [vmem:[%s1970_s23 + $0x170] sm:$0xff]  ;;  %v381_v34 = vld [vmem:[%s1970_s23 + $0x160] sm:$0xff] }
  0x55   : > { %595 = vmatmul.mubr.f32.vlgmr.msra.gmra.mxu0 %v337_v35  ;;  %715 = vmatmul.mubr.f32.vlgmr.msra.gmra.mxu1 %v409_v36  ;;  %v382_v35 = vld [vmem:[%s1970_s23 + $0x168] sm:$0xff]  ;;  %v384_v36 = vld [vmem:[%s1970_s23 + $0x178] sm:$0xff] }
  0x56   : > { %599 = vmatprep.mubr.f32.mxu0 %v341_v37  ;;  %719 = vmatprep.mubr.f32.mxu1 %v413_v38  ;;  %v386_v37 = vld [vmem:[%s1970_s23 + $0x188] sm:$0xff]  ;;  %v387_v38 = vld [vmem:[%s1970_s23 + $0x190] sm:$0xff] }
  0x57   : > { %1488 = vmatprep.subr.mxu1 %v332_v39 }
  0x58   : > { %1489 = vmatpush3.msra.mxu1 %v332_v39  ;;  %v385_v39 = vld [vmem:[%s1970_s23 + $0x180] sm:$0xff] }
  0x59   : > { %600 = vmatmul.mubr.f32.gmra.mxu0 %v340_v40  ;;  %720 = vmatmul.mubr.f32.gmra.mxu1 %v412_v41  ;;  %v390_v40 = vld [vmem:[%s1970_s23 + $0x1a8] sm:$0xff]  ;;  %v389_v41 = vld [vmem:[%s1970_s23 + $0x1a0] sm:$0xff] }
  0x5a   : > { %604 = vmatprep.mubr.f32.mxu0 %v344_v42  ;;  %724 = vmatprep.mubr.f32.mxu1 %v416_v43  ;;  %v393_v42 = vld [vmem:[%s1970_s23 + $0x1c0] sm:$0xff]  ;;  %v388_v43 = vld [vmem:[%s1970_s23 + $0x198] sm:$0xff] }
  0x5b   : > { %1490 = vmatprep.subr.mxu1 %v331_v44 }
  0x5c   : > { %1491 = vmatpush3.msra.mxu1 %v331_v44  ;;  %v396_v44 = vld [vmem:[%s1970_s23 + $0x1d8] sm:$0xff] }
  0x5d   : > { %605 = vmatmul.mubr.f32.gmra.mxu0 %v343_v45  ;;  %725 = vmatmul.mubr.f32.gmra.mxu1 %v415_v46  ;;  %v392_v45 = vld [vmem:[%s1970_s23 + $0x1b8] sm:$0xff]  ;;  %v399_v46 = vld [vmem:[%s1970_s23 + $0x1f0] sm:$0xff] }
  0x5e   : > { %609 = vmatprep.mubr.f32.mxu0 %v347_v47  ;;  %729 = vmatprep.mubr.f32.mxu1 %v419_v48  ;;  %v391_v47 = vld [vmem:[%s1970_s23 + $0x1b0] sm:$0xff]  ;;  %v402_v48 = vld [vmem:[%s1970_s23 + $0x208] sm:$0xff] }
  0x5f   : > { %1492 = vmatprep.subr.mxu1 %v330_v49 }
  0x60   : > { %1493 = vmatpush3.msra.mxu1 %v330_v49  ;;  %v395_v49 = vld [vmem:[%s1970_s23 + $0x1d0] sm:$0xff] }
  0x61   : > { %610 = vmatmul.mubr.f32.gmra.mxu0 %v346_v50  ;;  %730 = vmatmul.mubr.f32.gmra.mxu1 %v418_v51  ;;  %v405_v50 = vld [vmem:[%s1970_s23 + $0x220] sm:$0xff]  ;;  %v394_v51 = vld [vmem:[%s1970_s23 + $0x1c8] sm:$0xff] }
  0x62   : > { %614 = vmatprep.mubr.f32.mxu0 %v350_v52  ;;  %734 = vmatprep.mubr.f32.mxu1 %v422_v53  ;;  %v408_v52 = vld [vmem:[%s1970_s23 + $0x238] sm:$0xff]  ;;  %v398_v53 = vld [vmem:[%s1970_s23 + $0x1e8] sm:$0xff] }
  0x63   : > { %1494 = vmatprep.subr.mxu1 %v329_v54 }
  0x64   : > { %1495 = vmatpush3.msra.mxu1 %v329_v54  ;;  %v411_v54 = vld [vmem:[%s1970_s23 + $0x250] sm:$0xff] }
  0x65   : > { %615 = vmatmul.mubr.f32.gmra.mxu0 %v349_v55  ;;  %735 = vmatmul.mubr.f32.gmra.mxu1 %v421_v56  ;;  %v397_v55 = vld [vmem:[%s1970_s23 + $0x1e0] sm:$0xff]  ;;  %v414_v56 = vld [vmem:[%s1970_s23 + $0x268] sm:$0xff] }
  0x66   : > { %619 = vmatprep.mubr.f32.mxu0 %v353_v57  ;;  %739 = vmatprep.mubr.f32.mxu1 %v425_v58  ;;  %v401_v57 = vld [vmem:[%s1970_s23 + $0x200] sm:$0xff] }
  0x67   : > { %v417_v58 = vld [vmem:[%s1970_s23 + $0x280] sm:$0xff] }
  0x69   : > { %620 = vmatmul.mubr.f32.gmra.mxu0 %v352_v59  ;;  %740 = vmatmul.mubr.f32.gmra.mxu1 %v424_v60  ;;  %v400_v59 = vld [vmem:[%s1970_s23 + $0x1f8] sm:$0xff] }
  0x6a   : > { %624 = vmatprep.mubr.f32.mxu0 %v356_v61  ;;  %744 = vmatprep.mubr.f32.mxu1 %v428_v62  ;;  %v420_v60 = vld [vmem:[%s1970_s23 + $0x298] sm:$0xff]  ;;  %v423_v62 = vld [vmem:[%s1970_s23 + $0x2b0] sm:$0xff] }
  0x6b   : > { %v404_v61 = vld [vmem:[%s1970_s23 + $0x218] sm:$0xff] }
  0x6d   : > { %625 = vmatmul.mubr.f32.gmra.mxu0 %v355_v63  ;;  %745 = vmatmul.mubr.f32.gmra.mxu1 %v427_v0  ;;  %v403_v63 = vld [vmem:[%s1970_s23 + $0x210] sm:$0xff]  ;;  %v426_v0 = vld [vmem:[%s1970_s23 + $0x2c8] sm:$0xff] }
  0x6e   : > { %629 = vmatprep.mubr.f32.mxu0 %v359_v1  ;;  %749 = vmatprep.mubr.f32.mxu1 %v431_v2  ;;  %v407_v1 = vld [vmem:[%s1970_s23 + $0x230] sm:$0xff]  ;;  %v429_v2 = vld [vmem:[%s1970_s23 + $0x2e0] sm:$0xff] }
  0x71   : > { %630 = vmatmul.mubr.f32.gmra.mxu0 %v358_v3  ;;  %750 = vmatmul.mubr.f32.gmra.mxu1 %v430_v4  ;;  %v406_v3 = vld [vmem:[%s1970_s23 + $0x228] sm:$0xff]  ;;  %v432_v4 = vld [vmem:[%s1970_s23 + $0x2f8] sm:$0xff]  ;;  %s1328_s23 = sshll.u32 %s2479_s21, 4  ;;  %s2544_s23 = int_to_ptr.vmem [resolvable:$true] %s1328_s23 }
  0x72   : > { %634 = vmatprep.mubr.f32.mxu0 %v362_v5  ;;  %1496 = vmatprep.mubr.msk.f32.mxu1 %vm433_vm0, %v339_v6  ;;  %s1655_s14 = scalar_lea.vmem %s2544_s23, 4096  ;;  %p1662_p0 = scmp.lt.s32.totalorder %s2544_s23, %s1660_s16 }
  0x73   : > { %p1656_p11 = scmp.ne.s32.totalorder %s2544_s23, %s1655_s14  ;;  %p1663_p1 = scmp.lt.s32.totalorder %s1661_s17, %s1655_s14 }
  0x75   : > { %635 = vmatmul.mubr.f32.gmra.mxu0 %v361_v7  ;;  %1497 = vmatmul.mubr.msk.f32.vlgmr.msra.gmra.mxu1 %vm433_vm0, %v342_v8  ;;  %p1657_p12 = pnand %p1656_p11, %p1799_p5  ;;  %p1664_p2 = por %p1663_p1, %p1662_p0 }
  0x76   : > { %639 = vmatprep.mubr.f32.mxu0 %v365_v9  ;;  %1499 = vmatprep.mubr.msk.f32.mxu1 %vm433_vm0, %v345_v10 }
  0x77   : > { %p1658_p13 = pneg %p1657_p12 }
  0x79   : > { %640 = vmatmul.mubr.f32.gmra.mxu0 %v364_v11  ;;  %1500 = vmatmul.mubr.msk.f32.gmra.mxu1 %vm433_vm0, %v348_v12  ;;  %p1665_p3 = pnand %p1664_p2, %p1658_p13 }
  0x7a   : > { %644 = vmatprep.mubr.f32.mxu0 %v368_v13  ;;  %1502 = vmatprep.mubr.msk.f32.mxu1 %vm433_vm0, %v351_v14 }
  0x7d   : > { %645 = vmatmul.mubr.f32.gmra.mxu0 %v367_v15  ;;  %1503 = vmatmul.mubr.msk.f32.gmra.mxu1 %vm433_vm0, %v354_v16 }
  0x7e   : > { %649 = vmatprep.mubr.f32.mxu0 %v371_v17  ;;  %1505 = vmatprep.mubr.msk.f32.mxu1 %vm433_vm0, %v357_v18 }
  0x81   : > { %650 = vmatmul.mubr.f32.gmra.mxu0 %v370_v19  ;;  %1506 = vmatmul.mubr.msk.f32.gmra.mxu1 %vm433_vm0, %v360_v20 }
  0x82   : > { %654 = vmatprep.mubr.f32.mxu0 %v374_v21  ;;  %1508 = vmatprep.mubr.msk.f32.mxu1 %vm433_vm0, %v363_v22 }
  0x85   : > { %655 = vmatmul.mubr.f32.gmra.mxu0 %v373_v23  ;;  %1509 = vmatmul.mubr.msk.f32.gmra.mxu1 %vm433_vm0, %v366_v24 }
  0x86   : > { %659 = vmatprep.mubr.f32.mxu0 %v377_v25  ;;  %1511 = vmatprep.mubr.msk.f32.mxu1 %vm433_vm0, %v369_v26 }
  0x89   : > { %660 = vmatmul.mubr.f32.gmra.mxu0 %v376_v27  ;;  %1512 = vmatmul.mubr.msk.f32.gmra.mxu1 %vm433_vm0, %v372_v28 }
  0x8a   : > { %664 = vmatprep.mubr.f32.mxu0 %v380_v29  ;;  %1514 = vmatprep.mubr.msk.f32.mxu1 %vm433_vm0, %v375_v30 }
  0x8d   : > { %665 = vmatmul.mubr.f32.gmra.mxu0 %v379_v31  ;;  %1515 = vmatmul.mubr.msk.f32.gmra.mxu1 %vm433_vm0, %v378_v32 }
  0x8e   : > { %669 = vmatprep.mubr.f32.mxu0 %v383_v33  ;;  %1517 = vmatprep.mubr.msk.f32.mxu1 %vm433_vm0, %v381_v34 }
  0x91   : > { %670 = vmatmul.mubr.f32.gmra.mxu0 %v382_v35  ;;  %1518 = vmatmul.mubr.msk.f32.gmra.mxu1 %vm433_vm0, %v384_v36 }
  0x92   : > { %674 = vmatprep.mubr.f32.mxu0 %v386_v37  ;;  %1520 = vmatprep.mubr.msk.f32.mxu1 %vm433_vm0, %v387_v38  ;;  %v2138_v38 = vld [vmem:[%s2619_s3] ss:$0 sm:$0xff] }
  0x95   : > { %675 = vmatmul.mubr.f32.gmra.mxu0 %v385_v39  ;;  %1521 = vmatmul.mubr.msk.f32.gmra.mxu1 %vm433_vm0, %v390_v40 }
  0x96   : > { %679 = vmatprep.mubr.f32.mxu0 %v389_v41  ;;  %1523 = vmatprep.mubr.msk.f32.mxu1 %vm433_vm0, %v393_v42 }
  0x99   : > { %680 = vmatmul.mubr.f32.gmra.mxu0 %v388_v43  ;;  %1524 = vmatmul.mubr.msk.f32.gmra.mxu1 %vm433_vm0, %v396_v44  ;;  %v2143_v43 = vld [vmem:[%s2620_s4] ss:$0 sm:$0xff] }
  0x9a   : > { %684 = vmatprep.mubr.f32.mxu0 %v392_v45  ;;  %1526 = vmatprep.mubr.msk.f32.mxu1 %vm433_vm0, %v399_v46 }
  0x9d   : > { %685 = vmatmul.mubr.f32.gmra.mxu0 %v391_v47  ;;  %1527 = vmatmul.mubr.msk.f32.gmra.mxu1 %vm433_vm0, %v402_v48 }
  0x9e   : > { %689 = vmatprep.mubr.f32.mxu0 %v395_v49  ;;  %1529 = vmatprep.mubr.msk.f32.mxu1 %vm433_vm0, %v405_v50 }
  0xa1   : > { %690 = vmatmul.mubr.f32.gmra.mxu0 %v394_v51  ;;  %1530 = vmatmul.mubr.msk.f32.gmra.mxu1 %vm433_vm0, %v408_v52 }
  0xa2   : > { %694 = vmatprep.mubr.f32.mxu0 %v398_v53  ;;  %1532 = vmatprep.mubr.msk.f32.mxu1 %vm433_vm0, %v411_v54 }
  0xa5   : > { %695 = vmatmul.mubr.f32.gmra.mxu0 %v397_v55  ;;  %1533 = vmatmul.mubr.msk.f32.gmra.mxu1 %vm433_vm0, %v414_v56 }
  0xa6   : > { %699 = vmatprep.mubr.f32.mxu0 %v401_v57  ;;  %1535 = vmatprep.mubr.msk.f32.mxu1 %vm433_vm0, %v417_v58 }
  0xa9   : > { %700 = vmatmul.mubr.f32.gmra.mxu0 %v400_v59  ;;  %1536 = vmatmul.mubr.msk.f32.gmra.mxu1 %vm433_vm0, %v420_v60 }
  0xaa   : > { %704 = vmatprep.mubr.f32.mxu0 %v404_v61  ;;  %1538 = vmatprep.mubr.msk.f32.mxu1 %vm433_vm0, %v423_v62 }
  0xad   : > { %705 = vmatmul.mubr.f32.gmra.mxu0 %v403_v63  ;;  %1539 = vmatmul.mubr.msk.f32.gmra.mxu1 %vm433_vm0, %v426_v0 }
  0xae   : > { %709 = vmatprep.mubr.f32.mxu0 %v407_v1  ;;  %1541 = vmatprep.mubr.msk.f32.mxu1 %vm433_vm0, %v429_v2 }
  0xb1   : > { %710 = vmatmul.mubr.f32.gmra.mxu0 %v406_v3  ;;  %1542 = vmatmul.mubr.msk.f32.gmra.mxu1 %vm433_vm0, %v432_v4 }
 0x115   : > { %v596_v5 = vpop.f32.mrf.mxu0  ;;  %v2119_v6 = vpop.f32.mrf.mxu1 }
 0x117   : > { %v598_v7 = vpop.f32.mrf.mxu0  ;;  %v718_v8 = vpop.f32.mrf.mxu1 }
 0x119   : > { %v601_v9 = vpop.f32.mrf.mxu0  ;;  %v2121_v10 = vpop.f32.mrf.mxu1 }
 0x11b   : > { %v603_v11 = vpop.f32.mrf.mxu0  ;;  %v723_v12 = vpop.f32.mrf.mxu1 }
 0x11d   : > { %v606_v13 = vpop.f32.mrf.mxu0  ;;  %v2123_v14 = vpop.f32.mrf.mxu1 }
 0x11f   : > { %v608_v15 = vpop.f32.mrf.mxu0  ;;  %v728_v16 = vpop.f32.mrf.mxu1 }
 0x121   : > { %v611_v17 = vpop.f32.mrf.mxu0  ;;  %v2125_v18 = vpop.f32.mrf.mxu1 }
 0x123   : > { %v613_v19 = vpop.f32.mrf.mxu0  ;;  %v733_v20 = vpop.f32.mrf.mxu1 }
 0x125   : > { %v616_v21 = vpop.f32.mrf.mxu0  ;;  %v2127_v22 = vpop.f32.mrf.mxu1 }
 0x127   : > { %v618_v23 = vpop.f32.mrf.mxu0  ;;  %v738_v24 = vpop.f32.mrf.mxu1 }
 0x129   : > { %v621_v25 = vpop.f32.mrf.mxu0  ;;  %v2129_v26 = vpop.f32.mrf.mxu1 }
 0x12b   : > { %v623_v27 = vpop.f32.mrf.mxu0  ;;  %v743_v28 = vpop.f32.mrf.mxu1 }
 0x12d   : > { %v626_v29 = vpop.f32.mrf.mxu0  ;;  %v2131_v30 = vpop.f32.mrf.mxu1 }
 0x12f   : > { %v628_v31 = vpop.f32.mrf.mxu0  ;;  %v748_v32 = vpop.f32.mrf.mxu1 }
 0x131   : > { %v631_v33 = vpop.f32.mrf.mxu0  ;;  %v2133_v34 = vpop.f32.mrf.mxu1 }
 0x133   : > { %v633_v35 = vpop.f32.mrf.mxu0  ;;  %v753_v36 = vpop.f32.mrf.mxu1 }
 0x135   : > { %v636_v37 = vpop.f32.mrf.mxu0  ;;  %v1498_v39 = vpop.f32.mrf.mxu1 }
 0x136   : > { %v827_v40 = vadd.f32 %v1498_v39, %v601_v9 }
 0x137   : > { %v638_v41 = vpop.f32.mrf.mxu0  ;;  %v821_v42 = vpop.f32.mrf.mxu1 }
 0x138   : > { %v987_v44 = vmul.f32 %v2138_v38, %v827_v40  ;;  %v822_v45 = vadd.f32 %v821_v42, %v596_v5 }
 0x139   : > { %v641_v46 = vpop.f32.mrf.mxu0  ;;  %v1501_v47 = vpop.f32.mrf.mxu1 }
 0x13a   : > { %v986_v48 = vmul.f32 %v2138_v38, %v822_v45  ;;  %v837_v49 = vadd.f32 %v1501_v47, %v611_v17  ;;  %v2148_v50 = vadd.f32 %v2143_v43, %v987_v44 }
 0x13b   : > { %v643_v51 = vpop.f32.mrf.mxu0  ;;  %v831_v52 = vpop.f32.mrf.mxu1 }
 0x13c   : > { %v2151_v53 = vadd.f32 %v2143_v43, %v986_v48  ;;  %v989_v54 = vmul.f32 %v2138_v38, %v837_v49  ;;  %v832_v55 = vadd.f32 %v831_v52, %v606_v13  ;;  %v1057_v61 = vsel %vm433_vm0, %v2148_v50, 0.0 }
 0x13d   : > { %v646_v56 = vpop.f32.mrf.mxu0  ;;  %v1504_v57 = vpop.f32.mrf.mxu1 }
 0x13e   : > { %v1056_v58 = vsel %vm433_vm0, %v2151_v53, 0.0  ;;  %v988_v59 = vmul.f32 %v2138_v38, %v832_v55  ;;  %v847_v60 = vadd.f32 %v1504_v57, %v621_v25  ;;  %v2160_v0 = vadd.f32 %v2143_v43, %v989_v54 }
 0x13f   : > { %v648_v62 = vpop.f32.mrf.mxu0  ;;  %v841_v63 = vpop.f32.mrf.mxu1  ;;  %v1058_v4 = vadd.f32 %v1057_v61, %v1056_v58 }
 0x140   : > { %v2163_v1 = vadd.f32 %v2143_v43, %v988_v59  ;;  %v991_v2 = vmul.f32 %v2138_v38, %v847_v60  ;;  %v842_v3 = vadd.f32 %v841_v63, %v616_v21  ;;  %v1061_v17 = vsel %vm433_vm0, %v2160_v0, 0.0 }
 0x141   : > { %v651_v5 = vpop.f32.mrf.mxu0  ;;  %v1507_v7 = vpop.f32.mrf.mxu1 }
 0x142   : > { %v1059_v8 = vsel %vm433_vm0, %v2163_v1, 0.0  ;;  %v990_v9 = vmul.f32 %v2138_v38, %v842_v3  ;;  %v857_v11 = vadd.f32 %v1507_v7, %v631_v33  ;;  %v2170_v13 = vadd.f32 %v2143_v43, %v991_v2 }
 0x143   : > { %v1060_v12 = vadd.f32 %v1059_v8, %v1058_v4  ;;  %v653_v15 = vpop.f32.mrf.mxu0  ;;  %v851_v16 = vpop.f32.mrf.mxu1 }
 0x144   : > { %v2175_v19 = vadd.f32 %v2143_v43, %v990_v9  ;;  %v993_v20 = vmul.f32 %v2138_v38, %v857_v11  ;;  %v852_v21 = vadd.f32 %v851_v16, %v626_v29  ;;  %v1065_v32 = vsel %vm433_vm0, %v2170_v13, 0.0 }
 0x145   : > { %v1062_v23 = vadd.f32 %v1061_v17, %v1060_v12  ;;  %v656_v24 = vpop.f32.mrf.mxu0  ;;  %v1510_v25 = vpop.f32.mrf.mxu1 }
 0x146   : > { %v1063_v27 = vsel %vm433_vm0, %v2175_v19, 0.0  ;;  %v992_v28 = vmul.f32 %v2138_v38, %v852_v21  ;;  %v867_v31 = vadd.f32 %v1510_v25, %v641_v46  ;;  %v2184_v39 = vadd.f32 %v2143_v43, %v993_v20 }
 0x147   : > { %v1064_v33 = vadd.f32 %v1063_v27, %v1062_v23  ;;  %v658_v35 = vpop.f32.mrf.mxu0  ;;  %v861_v36 = vpop.f32.mrf.mxu1 }
 0x148   : > { %v2187_v29 = vadd.f32 %v2143_v43, %v992_v28  ;;  %v995_v40 = vmul.f32 %v2138_v38, %v867_v31  ;;  %v862_v41 = vadd.f32 %v861_v36, %v636_v37  ;;  %v1069_v55 = vsel %vm433_vm0, %v2184_v39, 0.0 }
 0x149   : > { %v1066_v42 = vadd.f32 %v1065_v32, %v1064_v33  ;;  %v661_v44 = vpop.f32.mrf.mxu0  ;;  %v1513_v45 = vpop.f32.mrf.mxu1 }
 0x14a   : > { %v1067_v46 = vsel %vm433_vm0, %v2187_v29, 0.0  ;;  %v994_v47 = vmul.f32 %v2138_v38, %v862_v41  ;;  %v877_v48 = vadd.f32 %v1513_v45, %v651_v5  ;;  %v2194_v51 = vadd.f32 %v2143_v43, %v995_v40 }
 0x14b   : > { %v1068_v49 = vadd.f32 %v1067_v46, %v1066_v42  ;;  %v663_v52 = vpop.f32.mrf.mxu0  ;;  %v871_v54 = vpop.f32.mrf.mxu1 }
 0x14c   : > { %v2199_v37 = vadd.f32 %v2143_v43, %v994_v47  ;;  %v997_v57 = vmul.f32 %v2138_v38, %v877_v48  ;;  %v872_v58 = vadd.f32 %v871_v54, %v646_v56  ;;  %v1073_v2 = vsel %vm433_vm0, %v2194_v51, 0.0 }
 0x14d   : > { %v1070_v59 = vadd.f32 %v1069_v55, %v1068_v49  ;;  %v666_v60 = vpop.f32.mrf.mxu0  ;;  %v1516_v61 = vpop.f32.mrf.mxu1 }
 0x14e   : > { %v1071_v62 = vsel %vm433_vm0, %v2199_v37, 0.0  ;;  %v996_v63 = vmul.f32 %v2138_v38, %v872_v58  ;;  %v2208_v7 = vadd.f32 %v2143_v43, %v997_v57  ;;  %v887_v56 = vadd.f32 %v1516_v61, %v661_v44 }
 0x14f   : > { %v1072_v3 = vadd.f32 %v1071_v62, %v1070_v59  ;;  %v668_v4 = vpop.f32.mrf.mxu0  ;;  %v881_v5 = vpop.f32.mrf.mxu1 }
 0x150   : > { %v2211_v8 = vadd.f32 %v2143_v43, %v996_v63  ;;  %v882_v9 = vadd.f32 %v881_v5, %v656_v24  ;;  %v1077_v25 = vsel %vm433_vm0, %v2208_v7, 0.0  ;;  %v999_v27 = vmul.f32 %v2138_v38, %v887_v56 }
 0x151   : > { %v1074_v11 = vadd.f32 %v1073_v2, %v1072_v3  ;;  %v671_v12 = vpop.f32.mrf.mxu0  ;;  %v1519_v15 = vpop.f32.mrf.mxu1 }
 0x152   : > { %v1075_v16 = vsel %vm433_vm0, %v2211_v8, 0.0  ;;  %v998_v17 = vmul.f32 %v2138_v38, %v882_v9  ;;  %v2226_v42 = vadd.f32 %v2143_v43, %v999_v27  ;;  %v897_v44 = vadd.f32 %v1519_v15, %v671_v12 }
 0x153   : > { %v1076_v20 = vadd.f32 %v1075_v16, %v1074_v11  ;;  %v673_v21 = vpop.f32.mrf.mxu0  ;;  %v891_v23 = vpop.f32.mrf.mxu1 }
 0x154   : > { %v2220_v28 = vadd.f32 %v2143_v43, %v998_v17  ;;  %v892_v24 = vadd.f32 %v891_v23, %v666_v60  ;;  %v1081_v55 = vsel %vm433_vm0, %v2226_v42, 0.0  ;;  %v1001_v57 = vmul.f32 %v2138_v38, %v897_v44 }
 0x155   : > { %v1078_v31 = vadd.f32 %v1077_v25, %v1076_v20  ;;  %v676_v32 = vpop.f32.mrf.mxu0  ;;  %v1522_v33 = vpop.f32.mrf.mxu1 }
 0x156   : > { %v1079_v35 = vsel %vm433_vm0, %v2220_v28, 0.0  ;;  %v1000_v36 = vmul.f32 %v2138_v38, %v892_v24  ;;  %v2238_v4 = vadd.f32 %v2143_v43, %v1001_v57 }
 0x157   : > { %v678_v40 = vpop.f32.mrf.mxu0  ;;  %v901_v41 = vpop.f32.mrf.mxu1  ;;  %v1080_v45 = vadd.f32 %v1079_v35, %v1078_v31 }
 0x158   : > { %v2229_v48 = vadd.f32 %v2143_v43, %v1000_v36  ;;  %v902_v49 = vadd.f32 %v901_v41, %v676_v32  ;;  %v1085_v21 = vsel %vm433_vm0, %v2238_v4, 0.0 }
 0x159   : > { %v681_v46 = vpop.f32.mrf.mxu0  ;;  %v1525_v47 = vpop.f32.mrf.mxu1  ;;  %v1082_v58 = vadd.f32 %v1081_v55, %v1080_v45 }
 0x15a   : > { %v1083_v61 = vsel %vm433_vm0, %v2229_v48, 0.0  ;;  %v1002_v62 = vmul.f32 %v2138_v38, %v902_v49  ;;  %v907_v63 = vadd.f32 %v1522_v33, %v681_v46 }
 0x15b   : > { %v683_v52 = vpop.f32.mrf.mxu0  ;;  %v911_v54 = vpop.f32.mrf.mxu1  ;;  %v1084_v56 = vadd.f32 %v1083_v61, %v1082_v58 }
 0x15c   : > { %v2241_v12 = vadd.f32 %v2143_v43, %v1002_v62  ;;  %v1003_v15 = vmul.f32 %v2138_v38, %v907_v63 }
 0x15d   : > { %v686_v59 = vpop.f32.mrf.mxu0  ;;  %v1528_v60 = vpop.f32.mrf.mxu1  ;;  %v1086_v25 = vadd.f32 %v1085_v21, %v1084_v56 }
 0x15e   : > { %v912_v5 = vadd.f32 %v911_v54, %v686_v59  ;;  %v1087_v31 = vsel %vm433_vm0, %v2241_v12, 0.0  ;;  %v2250_v32 = vadd.f32 %v2143_v43, %v1003_v15 }
 0x15f   : > { %v688_v2 = vpop.f32.mrf.mxu0  ;;  %v921_v3 = vpop.f32.mrf.mxu1  ;;  %v1088_v45 = vadd.f32 %v1087_v31, %v1086_v25 }
 0x160   : > { %v1004_v23 = vmul.f32 %v2138_v38, %v912_v5  ;;  %v1089_v49 = vsel %vm433_vm0, %v2250_v32, 0.0 }
 0x161   : > { %v691_v9 = vpop.f32.mrf.mxu0  ;;  %v1531_v11 = vpop.f32.mrf.mxu1  ;;  %v1090_v62 = vadd.f32 %v1089_v49, %v1088_v45 }
 0x162   : > { %v917_v16 = vadd.f32 %v1525_v47, %v691_v9  ;;  %v2254_v41 = vadd.f32 %v2143_v43, %v1004_v23 }
 0x163   : > { %v693_v17 = vpop.f32.mrf.mxu0  ;;  %v931_v20 = vpop.f32.mrf.mxu1 }
 0x164   : > { %v1005_v33 = vmul.f32 %v2138_v38, %v917_v16  ;;  %v1091_v58 = vsel %vm433_vm0, %v2254_v41, 0.0 }
 0x165   : > { %v696_v27 = vpop.f32.mrf.mxu0  ;;  %v1534_v24 = vpop.f32.mrf.mxu1  ;;  %v1092_v9 = vadd.f32 %v1091_v58, %v1090_v62 }
 0x166   : > { %v922_v35 = vadd.f32 %v921_v3, %v696_v27  ;;  %v2260_v52 = vadd.f32 %v2143_v43, %v1005_v33  ;;  %v947_v21 = vadd.f32 %v1534_v24, %v2121_v10 }
 0x167   : > { %v698_v36 = vpop.f32.mrf.mxu0  ;;  %v941_v40 = vpop.f32.mrf.mxu1 }
 0x168   : > { %v1006_v44 = vmul.f32 %v2138_v38, %v922_v35  ;;  %v942_v63 = vadd.f32 %v941_v40, %v2119_v6  ;;  %v1093_v5 = vsel %vm433_vm0, %v2260_v52, 0.0  ;;  %v1011_v10 = vmul.f32 %v2138_v38, %v947_v21 }
 0x169   : > { %v701_v46 = vpop.f32.mrf.mxu0  ;;  %v1537_v47 = vpop.f32.mrf.mxu1  ;;  %v1094_v6 = vadd.f32 %v1093_v5, %v1092_v9 }
 0x16a   : > { %v927_v54 = vadd.f32 %v1528_v60, %v701_v46  ;;  %v2265_v59 = vadd.f32 %v2143_v43, %v1006_v44  ;;  %v1010_v25 = vmul.f32 %v2138_v38, %v942_v63  ;;  %v957_v24 = vadd.f32 %v1537_v47, %v2125_v18 }
 0x16b   : > { %v703_v55 = vpop.f32.mrf.mxu0  ;;  %v951_v57 = vpop.f32.mrf.mxu1  ;;  %v2299_v18 = vadd.f32 %v2143_v43, %v1011_v10 }
 0x16c   : > { %v1007_v61 = vmul.f32 %v2138_v38, %v927_v54  ;;  %v1095_v17 = vsel %vm433_vm0, %v2265_v59, 0.0  ;;  %v952_v33 = vadd.f32 %v951_v57, %v2123_v14  ;;  %v2291_v54 = vadd.f32 %v2143_v43, %v1010_v25 }
 0x16d   : > { %v706_v2 = vpop.f32.mrf.mxu0  ;;  %v1540_v3 = vpop.f32.mrf.mxu1  ;;  %v1096_v36 = vadd.f32 %v1095_v17, %v1094_v6  ;;  %v1013_v47 = vmul.f32 %v2138_v38, %v957_v24 }
 0x16e   : > { %v2272_v60 = vadd.f32 %v2143_v43, %v1007_v61  ;;  %v932_v56 = vadd.f32 %v931_v20, %v706_v2  ;;  %v1012_v14 = vmul.f32 %v2138_v38, %v952_v33  ;;  %v967_v61 = vadd.f32 %v1540_v3, %v2129_v26 }
 0x16f   : > { %v708_v15 = vpop.f32.mrf.mxu0  ;;  %v961_v16 = vpop.f32.mrf.mxu1  ;;  %v1103_v2 = vsel %vm433_vm0, %v2291_v54, 0.0  ;;  %v2315_v26 = vadd.f32 %v2143_v43, %v1013_v47 }
 0x170   : > { %v1008_v23 = vmul.f32 %v2138_v38, %v932_v56  ;;  %v1097_v31 = vsel %vm433_vm0, %v2272_v60, 0.0  ;;  %v1105_v15 = vsel %vm433_vm0, %v2299_v18, 0.0  ;;  %v1015_v3 = vmul.f32 %v2138_v38, %v967_v61 }
 0x171   : > { %v711_v27 = vpop.f32.mrf.mxu0  ;;  %v1543_v40 = vpop.f32.mrf.mxu1  ;;  %v1098_v49 = vadd.f32 %v1097_v31, %v1096_v36  ;;  %v1109_v25 = vsel %vm433_vm0, %v2315_v26, 0.0 }
 0x172   : > { %v2283_v20 = vadd.f32 %v2143_v43, %v1008_v23  ;;  %v937_v35 = vadd.f32 %v1531_v11, %v711_v27  ;;  %v962_v11 = vadd.f32 %v961_v16, %v2127_v22  ;;  %v2308_v22 = vadd.f32 %v2143_v43, %v1012_v14 }
 0x173   : > { %v713_v44 = vpop.f32.mrf.mxu0  ;;  %v971_v58 = vpop.f32.mrf.mxu1  ;;  %v977_v16 = vadd.f32 %v1543_v40, %v2133_v34  ;;  %v2328_v27 = vadd.f32 %v2143_v43, %v1015_v3 }
 0x174   : > { %v1099_v45 = vsel %vm433_vm0, %v2283_v20, 0.0  ;;  %v1009_v46 = vmul.f32 %v2138_v38, %v937_v35  ;;  %v1014_v5 = vmul.f32 %v2138_v38, %v962_v11  ;;  %v972_v56 = vadd.f32 %v971_v58, %v2131_v30 }
 0x175   : > { %v1100_v57 = vadd.f32 %v1099_v45, %v1098_v49  ;;  %v1107_v21 = vsel %vm433_vm0, %v2308_v22, 0.0  ;;  %v1017_v31 = vmul.f32 %v2138_v38, %v977_v16  ;;  %v1113_v40 = vsel %vm433_vm0, %v2328_v27, 0.0 }
 0x176   : > { %v2296_v55 = vadd.f32 %v2143_v43, %v1009_v46  ;;  %v2322_v23 = vadd.f32 %v2143_v43, %v1014_v5  ;;  %v1016_v30 = vmul.f32 %v2138_v38, %v972_v56  ;;  %v336_v5 = vld [vmem:[%s2622_s6] sm:$0x3] }
 0x177   : > { %v2339_v44 = vadd.f32 %v2143_v43, %v1017_v31 }
 0x178   : > { %v1101_v62 = vsel %vm433_vm0, %v2296_v55, 0.0  ;;  %v1111_v34 = vsel %vm433_vm0, %v2322_v23, 0.0  ;;  %v2334_v35 = vadd.f32 %v2143_v43, %v1016_v30  ;;  %v335_v43 = vld [vmem:[%s2621_s5] sm:$0x3] }
 0x179   : > { %v1102_v63 = vadd.f32 %v1101_v62, %v1100_v57  ;;  %v1117_v38 = vsel %vm433_vm0, %v2339_v44, 0.0 }
 0x17a   : > { %v1115_v24 = vsel %vm433_vm0, %v2334_v35, 0.0 }
 0x17b   : > { %v1104_v9 = vadd.f32 %v1103_v2, %v1102_v63 }
 0x17d   : > { %v1106_v17 = vadd.f32 %v1105_v15, %v1104_v9 }
 0x17f   : > { %v1108_v6 = vadd.f32 %v1107_v21, %v1106_v17 }
 0x181   : > { %v1110_v33 = vadd.f32 %v1109_v25, %v1108_v6 }
 0x183   : > { %v1112_v36 = vadd.f32 %v1111_v34, %v1110_v33  ;;  %v1150_v33 = vlaneseq }
 0x185   : > { %v1114_v10 = vadd.f32 %v1113_v40, %v1112_v36  ;;  %v1151_v34 = vshrl.u32 %v1150_v33, 7 }
 0x187   : > { %v1116_v45 = vadd.f32 %v1115_v24, %v1114_v10  ;;  %v1152_v36 = vsub.s32 0, %v1151_v34  ;;  %v1210_v34 = vld [vmem:[%s2355_s19 + $0xc0] sm:$0xff] }
 0x189   : > { %v1118_v46 = vadd.f32 %v1117_v38, %v1116_v45 }
 0x18b   : > { %v1119_v49 = vrot.slane %v1118_v46, 4 }
 0x18d   : > { %v1120_v14 = vadd.f32 %v1119_v49, %v1118_v46 }
 0x18f   : > { %v1121_v11 = vrot.slane %v1120_v14, 2 }
 0x191   : > { %v1122_v57 = vadd.f32 %v1121_v11, %v1120_v14 }
 0x193   : > { %v1123_v58 = vrot.slane %v1122_v57, 1 }
 0x195   : > { %v1124_v47 = vadd.f32 %v1123_v58, %v1122_v57  ;;  %v1187_v58 = vld [vmem:[%s2355_s19 + $0x8] sm:$0xff] }
 0x197   : > { %v1125_v61 = vmul.f32 0.00390625, %v1124_v47  ;;  %v1188_v47 = vld [vmem:[%s2355_s19 + $0x10] sm:$0xff] }
 0x199   : > { %v1126_v62 = vmul.f32 %v1125_v61, %v335_v43  ;;  %v1192_v61 = vld [vmem:[%s2355_s19 + $0x30] sm:$0xff] }
 0x19b   : > { %v1135_v63 = vsel %vm1134_vm1, %v1126_v62, 0.0  ;;  %v1128_v2 = vsel %vm1127_vm2, %v1126_v62, 0.0 }
 0x19c   : > { %1136 = vadd.xlane.f32.xlu0 %v1135_v63 }
 0x1a0   : > { %1129 = vadd.xlane.f32.xlu0 %v1128_v2 }
 0x225   : > { %v1137_v56 = vpop.xlane.xlu0 %1136 }
 0x226   : > { %v1138_v9 = vmax.f32 %v1137_v56, 0.0 }
 0x228   : > { %v1139_v15 = vmul.f32 %v1138_v9, %v336_v5 }
 0x229   : > { %v1130_v3 = vpop.xlane.xlu0 %1129 }
 0x22a   : > { %v1131_v16 = vmax.f32 %v1130_v3, 0.0  ;;  %v1141_v17 = vrot.slane %v1139_v15, 1  ;;  %v1198_v15 = vld [vmem:[%s2355_s19 + $0x60] sm:$0xff] }
 0x22c   : > { %v1132_v21 = vmul.f32 %v1131_v16, %v336_v5 }
 0x22e   : > { %v1143_v30 = vadd.f32 %v1141_v17, %v1132_v21 }
 0x230   : > { %v1444_v6 = vmul.f32 -1.442695, %v1143_v30 }
 0x232   : > { %1651 = vpow2.f32 %v1444_v6 }
 0x23f   : > { %v1652_v25 = vpop.eup %1651 }
 0x240   : > { %v1147_v31 = vadd.f32 1.0, %v1652_v25 }
 0x242   : > { %1653 = vrcp.f32 %v1147_v31 }
 0x24f   : > { %v1654_v40 = vpop.eup %1653 }
 0x250   : > { %v1153_v10 = vrot.slane %v1654_v40, %v1152_v36 }
 0x252   : > { %v1154_v24 = vmul.f32 %v1153_v10, %v2151_v53  ;;  %v1155_v45 = vmul.f32 %v1153_v10, %v2148_v50  ;;  %v1156_v38 = vmul.f32 %v1153_v10, %v2163_v1  ;;  %v1157_v46 = vmul.f32 %v1153_v10, %v2160_v0 }
 0x253   : > { %v1158_v49 = vmul.f32 %v1153_v10, %v2175_v19  ;;  %v1159_v14 = vmul.f32 %v1153_v10, %v2170_v13  ;;  %v1160_v11 = vmul.f32 %v1153_v10, %v2187_v29  ;;  %v1161_v57 = vmul.f32 %v1153_v10, %v2184_v39  ;;  %v1186_v19 = vld [vmem:[%s2355_s19] sm:$0xff]  ;;  %v1189_v13 = vld [vmem:[%s2355_s19 + $0x18] sm:$0xff] }
 0x254   : > { %v1162_v53 = vmul.f32 %v1153_v10, %v2199_v37  ;;  %v1163_v50 = vmul.f32 %v1153_v10, %v2194_v51  ;;  %v1164_v1 = vmul.f32 %v1153_v10, %v2211_v8  ;;  %v1165_v0 = vmul.f32 %v1153_v10, %v2208_v7  ;;  %v1191_v51 = vld [vmem:[%s2355_s19 + $0x28] sm:$0xff]  ;;  %v1190_v8 = vld [vmem:[%s2355_s19 + $0x20] sm:$0xff]  ;;  %v1193_v7 = vld [vmem:[%s2355_s19 + $0x38] sm:$0xff] }
 0x255   : > { %v1166_v29 = vmul.f32 %v1153_v10, %v2220_v28  ;;  %v1167_v39 = vmul.f32 %v1153_v10, %v2226_v42  ;;  %v1168_v43 = vmul.f32 %v1153_v10, %v2229_v48  ;;  %v1169_v37 = vmul.f32 %v1153_v10, %v2238_v4  ;;  %v1195_v42 = vld [vmem:[%s2355_s19 + $0x48] sm:$0xff]  ;;  %v1194_v48 = vld [vmem:[%s2355_s19 + $0x40] sm:$0xff]  ;;  %v1197_v4 = vld [vmem:[%s2355_s19 + $0x58] sm:$0xff] }
 0x256   : > { %v1170_v62 = vmul.f32 %v1153_v10, %v2241_v12  ;;  %v1171_v63 = vmul.f32 %v1153_v10, %v2250_v32  ;;  %v1172_v2 = vmul.f32 %v1153_v10, %v2254_v41  ;;  %v1173_v28 = vmul.f32 %v1153_v10, %v2260_v52  ;;  %v1196_v32 = vld [vmem:[%s2355_s19 + $0x50] sm:$0xff]  ;;  %v1199_v41 = vld [vmem:[%s2355_s19 + $0x68] sm:$0xff] }
 0x257   : > { %v1174_v5 = vmul.f32 %v1153_v10, %v2265_v59  ;;  %v1175_v56 = vmul.f32 %v1153_v10, %v2272_v60  ;;  %v1176_v9 = vmul.f32 %v1153_v10, %v2283_v20  ;;  %v1177_v12 = vmul.f32 %v1153_v10, %v2296_v55  ;;  %v1201_v60 = vld [vmem:[%s2355_s19 + $0x78] sm:$0xff]  ;;  %v1200_v20 = vld [vmem:[%s2355_s19 + $0x70] sm:$0xff]  ;;  %v1202_v55 = vld [vmem:[%s2355_s19 + $0x80] sm:$0xff] }
 0x258   : > { %v1178_v52 = vmul.f32 %v1153_v10, %v2291_v54  ;;  %v1179_v3 = vmul.f32 %v1153_v10, %v2299_v18  ;;  %v1180_v16 = vmul.f32 %v1153_v10, %v2308_v22  ;;  %v1181_v59 = vmul.f32 %v1153_v10, %v2315_v26  ;;  %v1203_v18 = vld [vmem:[%s2355_s19 + $0x88] sm:$0xff]  ;;  %v1204_v22 = vld [vmem:[%s2355_s19 + $0x90] sm:$0xff]  ;;  %v1205_v26 = vld [vmem:[%s2355_s19 + $0x98] sm:$0xff] }
 0x259   : > { %v1182_v17 = vmul.f32 %v1153_v10, %v2322_v23  ;;  %v1183_v21 = vmul.f32 %v1153_v10, %v2328_v27  ;;  %v1184_v30 = vmul.f32 %v1153_v10, %v2334_v35  ;;  %v1185_v54 = vmul.f32 %v1153_v10, %v2339_v44  ;;  %v1206_v23 = vld [vmem:[%s2355_s19 + $0xa0] sm:$0xff]  ;;  %v1211_v27 = vld [vmem:[%s2355_s19 + $0xc8] sm:$0xff] }
 0x25a   : > { %v1218_v6 = vadd.f32 %v1186_v19, %v1154_v24  ;;  %v1219_v25 = vadd.f32 %v1187_v58, %v1155_v45  ;;  %v1220_v31 = vadd.f32 %v1188_v47, %v1156_v38  ;;  %v1221_v33 = vadd.f32 %v1189_v13, %v1157_v46  ;;  %v1207_v10 = vld [vmem:[%s2355_s19 + $0xa8] sm:$0xff]  ;;  %v1208_v19 = vld [vmem:[%s2355_s19 + $0xb0] sm:$0xff]  ;;  %v1209_v24 = vld [vmem:[%s2355_s19 + $0xb8] sm:$0xff] }
 0x25b   : > { %v1222_v35 = vadd.f32 %v1190_v8, %v1158_v49  ;;  %v1223_v36 = vadd.f32 %v1191_v51, %v1159_v14  ;;  %v1224_v44 = vadd.f32 %v1192_v61, %v1160_v11  ;;  %v1225_v40 = vadd.f32 %v1193_v7, %v1161_v57  ;;  %v1213_v13 = vld [vmem:[%s2355_s19 + $0xd8] sm:$0xff]  ;;  %v1212_v49 = vld [vmem:[%s2355_s19 + $0xd0] sm:$0xff]  ;;  %v1215_v14 = vld [vmem:[%s2355_s19 + $0xe8] sm:$0xff] }
 0x25c   : > { %v2416_v45 = vadd.f32 %v1194_v48, %v1162_v53  ;;  %v2418_v38 = vadd.f32 %v1195_v42, %v1163_v50  ;;  %v2420_v46 = vadd.f32 %v1196_v32, %v1164_v1  ;;  %v2422_v58 = vadd.f32 %v1197_v4, %v1165_v0  ;;  %v1214_v53 = vld [vmem:[%s2355_s19 + $0xe0] sm:$0xff]  ;;  %v1217_v50 = vld [vmem:[%s2355_s19 + $0xf8] sm:$0xff]  ;;  %v1216_v1 = vld [vmem:[%s2355_s19 + $0xf0] sm:$0xff] }
 0x25d   : > { %v2427_v11 = vadd.f32 %v1198_v15, %v1166_v29  ;;  %v2429_v57 = vadd.f32 %v1199_v41, %v1167_v39  ;;  %v2431_v47 = vadd.f32 %v1200_v20, %v1168_v43  ;;  %v2433_v51 = vadd.f32 %v1201_v60, %v1169_v37 }
 0x25e   : > { %v2442_v8 = vadd.f32 %v1202_v55, %v1170_v62  ;;  %v2444_v0 = vadd.f32 %v1203_v18, %v1171_v63  ;;  %v2446_v7 = vadd.f32 %v1204_v22, %v1172_v2  ;;  %v2448_v29 = vadd.f32 %v1205_v26, %v1173_v28 }
 0x25f   : > { %v2450_v39 = vadd.f32 %v1206_v23, %v1174_v5  ;;  %v2452_v43 = vadd.f32 %v1207_v10, %v1175_v56  ;;  %v2454_v37 = vadd.f32 %v1208_v19, %v1176_v9  ;;  %v2456_v61 = vadd.f32 %v1209_v24, %v1177_v12 }
 0x260   : > { %v2458_v42 = vadd.f32 %v1210_v34, %v1178_v52  ;;  %v2460_v48 = vadd.f32 %v1211_v27, %v1179_v3  ;;  %v2462_v62 = vadd.f32 %v1212_v49, %v1180_v16  ;;  %v2464_v63 = vadd.f32 %v1213_v13, %v1181_v59 }
 0x261   : > { %v2466_v2 = vadd.f32 %v1214_v53, %v1182_v17  ;;  %v2468_v28 = vadd.f32 %v1215_v14, %v1183_v21  ;;  %v2470_v4 = vadd.f32 %v1216_v1, %v1184_v30  ;;  %v2472_v5 = vadd.f32 %v1217_v50, %v1185_v54 }
 0x262   : > { %v1250_v56 = vmax.f32 %v1218_v6, 0.0  ;;  %v1251_v9 = vmax.f32 %v1219_v25, 0.0  ;;  %v1252_v12 = vmax.f32 %v1220_v31, 0.0  ;;  %v1253_v32 = vmax.f32 %v1221_v33, 0.0 }
 0x263   : > { %v1254_v41 = vmax.f32 %v1222_v35, 0.0  ;;  %v1255_v15 = vmax.f32 %v1223_v36, 0.0  ;;  %v1256_v52 = vmax.f32 %v1224_v44, 0.0  ;;  %v1257_v3 = vmax.f32 %v1225_v40, 0.0 }
 0x264   : > { %v1258_v16 = vmax.f32 %v2416_v45, 0.0  ;;  %v1259_v59 = vmax.f32 %v2418_v38, 0.0  ;;  %v1260_v60 = vmax.f32 %v2420_v46, 0.0  ;;  %v1261_v20 = vmax.f32 %v2422_v58, 0.0  ;;  %1282 = vst.msk [vmem:[%s2479_s21] sm:$0xff] %vm433_vm0, %v1250_v56  ;;  %1283 = vst.msk [vmem:[%s2479_s21 + $0x8] sm:$0xff] %vm433_vm0, %v1251_v9 }
 0x265   : > { %1284 = vst.msk [vmem:[%s2479_s21 + $0x10] sm:$0xff] %vm433_vm0, %v1252_v12  ;;  %1285 = vst.msk [vmem:[%s2479_s21 + $0x18] sm:$0xff] %vm433_vm0, %v1253_v32  ;;  %v1262_v55 = vmax.f32 %v2427_v11, 0.0  ;;  %v1263_v17 = vmax.f32 %v2429_v57, 0.0  ;;  %v1264_v21 = vmax.f32 %v2431_v47, 0.0  ;;  %v1265_v30 = vmax.f32 %v2433_v51, 0.0 }
 0x266   : > { %1286 = vst.msk [vmem:[%s2479_s21 + $0x20] sm:$0xff] %vm433_vm0, %v1254_v41  ;;  %1287 = vst.msk [vmem:[%s2479_s21 + $0x28] sm:$0xff] %vm433_vm0, %v1255_v15  ;;  %v1266_v54 = vmax.f32 %v2442_v8, 0.0  ;;  %v1267_v18 = vmax.f32 %v2444_v0, 0.0  ;;  %v1268_v22 = vmax.f32 %v2446_v7, 0.0  ;;  %v1269_v26 = vmax.f32 %v2448_v29, 0.0 }
 0x267   : > { %1288 = vst.msk [vmem:[%s2479_s21 + $0x30] sm:$0xff] %vm433_vm0, %v1256_v52  ;;  %1289 = vst.msk [vmem:[%s2479_s21 + $0x38] sm:$0xff] %vm433_vm0, %v1257_v3  ;;  %v1270_v6 = vmax.f32 %v2450_v39, 0.0  ;;  %v1271_v25 = vmax.f32 %v2452_v43, 0.0  ;;  %v1272_v31 = vmax.f32 %v2454_v37, 0.0  ;;  %v1273_v33 = vmax.f32 %v2456_v61, 0.0 }
 0x268   : > { %1290 = vst.msk [vmem:[%s2479_s21 + $0x40] sm:$0xff] %vm433_vm0, %v1258_v16  ;;  %1291 = vst.msk [vmem:[%s2479_s21 + $0x48] sm:$0xff] %vm433_vm0, %v1259_v59  ;;  %v1274_v23 = vmax.f32 %v2458_v42, 0.0  ;;  %v1275_v27 = vmax.f32 %v2460_v48, 0.0  ;;  %v1276_v34 = vmax.f32 %v2462_v62, 0.0  ;;  %v1277_v35 = vmax.f32 %v2464_v63, 0.0 }
 0x269   : > { %1292 = vst.msk [vmem:[%s2479_s21 + $0x50] sm:$0xff] %vm433_vm0, %v1260_v60  ;;  %1293 = vst.msk [vmem:[%s2479_s21 + $0x58] sm:$0xff] %vm433_vm0, %v1261_v20  ;;  %v1278_v36 = vmax.f32 %v2466_v2, 0.0  ;;  %v1279_v44 = vmax.f32 %v2468_v28, 0.0  ;;  %v1280_v40 = vmax.f32 %v2470_v4, 0.0  ;;  %v1281_v10 = vmax.f32 %v2472_v5, 0.0 }
 0x26a   : > { %1294 = vst.msk [vmem:[%s2479_s21 + $0x60] sm:$0xff] %vm433_vm0, %v1262_v55  ;;  %1295 = vst.msk [vmem:[%s2479_s21 + $0x68] sm:$0xff] %vm433_vm0, %v1263_v17 }
 0x26b   : > { %1296 = vst.msk [vmem:[%s2479_s21 + $0x70] sm:$0xff] %vm433_vm0, %v1264_v21  ;;  %1297 = vst.msk [vmem:[%s2479_s21 + $0x78] sm:$0xff] %vm433_vm0, %v1265_v30 }
 0x26c   : > { %1298 = vst.msk [vmem:[%s2479_s21 + $0x80] sm:$0xff] %vm433_vm0, %v1266_v54  ;;  %1299 = vst.msk [vmem:[%s2479_s21 + $0x88] sm:$0xff] %vm433_vm0, %v1267_v18 }
 0x26d   : > { %1300 = vst.msk [vmem:[%s2479_s21 + $0x90] sm:$0xff] %vm433_vm0, %v1268_v22  ;;  %1301 = vst.msk [vmem:[%s2479_s21 + $0x98] sm:$0xff] %vm433_vm0, %v1269_v26 }
 0x26e   : > { %1302 = vst.msk [vmem:[%s2479_s21 + $0xa0] sm:$0xff] %vm433_vm0, %v1270_v6  ;;  %1303 = vst.msk [vmem:[%s2479_s21 + $0xa8] sm:$0xff] %vm433_vm0, %v1271_v25 }
 0x26f   : > { %1304 = vst.msk [vmem:[%s2479_s21 + $0xb0] sm:$0xff] %vm433_vm0, %v1272_v31  ;;  %1305 = vst.msk [vmem:[%s2479_s21 + $0xb8] sm:$0xff] %vm433_vm0, %v1273_v33 }
 0x270   : > { %1306 = vst.msk [vmem:[%s2479_s21 + $0xc0] sm:$0xff] %vm433_vm0, %v1274_v23  ;;  %1307 = vst.msk [vmem:[%s2479_s21 + $0xc8] sm:$0xff] %vm433_vm0, %v1275_v27 }
 0x271   : > { %1308 = vst.msk [vmem:[%s2479_s21 + $0xd0] sm:$0xff] %vm433_vm0, %v1276_v34  ;;  %1309 = vst.msk [vmem:[%s2479_s21 + $0xd8] sm:$0xff] %vm433_vm0, %v1277_v35 }
 0x272   : > { %1310 = vst.msk [vmem:[%s2479_s21 + $0xe0] sm:$0xff] %vm433_vm0, %v1278_v36  ;;  %1311 = vst.msk [vmem:[%s2479_s21 + $0xe8] sm:$0xff] %vm433_vm0, %v1279_v44 }
 0x273   : > { %1312 = vst.msk [vmem:[%s2479_s21 + $0xf0] sm:$0xff] %vm433_vm0, %v1280_v40  ;;  %1313 = vst.msk [vmem:[%s2479_s21 + $0xf8] sm:$0xff] %vm433_vm0, %v1281_v10 }
 0x274   : > { %1668 = shalt.err (!%p1665_p3)
}
 0x275   : > { %s1669_s18 = scalar_lea.hbm %s2542_s9, 4096  ;;  %s1673_s20 = scalar_lea.hbm %s2623_s7, 8192 }
 0x276   : > { %p1670_p4 = scmp.ne.s32.totalorder %s2542_s9, %s1669_s18  ;;  %p1674_p9 = scmp.lt.s32.totalorder %s2542_s9, %s2623_s7 }
 0x277   : > { %p1675_p10 = scmp.lt.s32.totalorder %s1673_s20, %s1669_s18 }
 0x278   : > { %p1671_p7 = pnand %p1670_p4, %p1799_p5 }
 0x279   : > { %p1676_p11 = por %p1675_p10, %p1674_p9 }
 0x27a   : > { %p1672_p8 = pneg %p1671_p7 }
 0x27c   : > { %p1677_p12 = pnand %p1676_p11, %p1672_p8 }
 0x27e   : > { %1680 = shalt.err (!%p1677_p12)
}
 0x27f   : > { %s1719_s28 = smov 128   ;;  %s1720_s29 = smov 8  }
 0x280   : > { %1609 = dma.vmem_to_hbm [thread:$0]  (%p1799_p5), %s2544_s23, 4096, %s2542_s9, %s2576_s13, %s1719_s28, %s1719_s28, %s1720_s29  }
 0x281 PF: > { %p1615_p13 = scmp.ge.s32.totalorder %s1715_s27, 2  ;;  %s1343_s14 = sand.u32 1, %s1703_s24  }
 0x282   : > { %s1344_s15 = scalar_lea.sflag [#allocation3], %s1343_s14 }
 0x283   : > { %p1612_p0 = pnand %p1615_p13, %p1803_p6 }
 0x285   : > { %p1613_p1 = pneg %p1612_p0 }
 0x287   : > { %1698 = dma.done.wait (%p1613_p1), %s1344_s15, 4096  }
 0x288   : > { %1700 = vsyncadd (%p1613_p1), %s1344_s15, 4294963200  ;;  %p17_p2 = scmp.ge.s32.totalorder %s1786_s30, 4   ;;  %s2626_s24 = smov %s1707_s25 }
 0x289   : > { %s2627_s25 = smov %s1711_s26  ;;  %s2628_s26 = smov %s1797_s10 }
 0x28a   : > { %s2629_s27 = smov %s1786_s30  ;;  %19 = sbr.rel (!%p17_p2) target bundleno = 3 (0x3), region = 86 }
 0x28f   :  { %1349 = vsyncpa [#allocation3], 1 }
 0x290   :  { %1351 = vsyncpa [#allocation3 + $0x1], 1 }

</bundles_post_ra>
